<compile_context>
chip_gen: v7x
topology: tpu7x:2x2x1
jax: 0.10.0
libtpu: 0.0.40
codegen_flags: <defaults>
</compile_context>

<pallas_src>
import functools
import math

import jax
import jax.numpy as jnp
from jax import lax
from jax.experimental import pallas as pl
from jax.experimental.pallas import tpu as pltpu


# Scoped-VMEM budget: safe on v5e/v6e (128 MiB physical) and v7x (64 MiB).
_VMEM_LIMIT = 40 * 1024 * 1024


# ----------------------------------------------------------------------------
# Tiled projection kernels (grid = (G, M tiles, N tiles), all parallel).
#   proj1: y[g] = x @ w[g] + b[g]              (shared input, per-group weights)
#   proj2: y[g] = a @ wa[g] + c @ wc[g] + b[g] (split-weight dual matmul, used
#          to consume the bidirectional (fwd, rev) hidden pair without concat)
# Weights arrive pre-cast to bf16; activations are cast in-kernel; fp32 accum.
# ----------------------------------------------------------------------------
def _proj1_kernel(x_ref, w_ref, b_ref, o_ref):
    acc = jnp.dot(x_ref[...].astype(jnp.bfloat16), w_ref[...],
                  preferred_element_type=jnp.float32)
    o_ref[...] = (acc + b_ref[...]).astype(o_ref.dtype)


def _proj2_kernel(a_ref, c_ref, wa_ref, wc_ref, b_ref, o_ref):
    acc = jnp.dot(a_ref[...].astype(jnp.bfloat16), wa_ref[...],
                  preferred_element_type=jnp.float32)
    acc = acc + jnp.dot(c_ref[...].astype(jnp.bfloat16), wc_ref[...],
                        preferred_element_type=jnp.float32)
    o_ref[...] = (acc + b_ref[...]).astype(o_ref.dtype)


def _proj_tiles(M, N, tm, tn):
    tm = min(tm, M)
    tn = min(tn, N)
    return tm, tn, pl.cdiv(M, tm), pl.cdiv(N, tn)


def proj1(x, w, b, *, out_dtype=jnp.float32, tm=512, tn=512):
    """x: (M, K) f32; w: (G, K, N) bf16; b: (G, 1, N) f32 -> (G, M, N)."""
    M, K = x.shape
    G, _, N = w.shape
    tm, tn, mt, nt = _proj_tiles(M, N, tm, tn)
    return pl.pallas_call(
        _proj1_kernel,
        out_shape=jax.ShapeDtypeStruct((G, M, N), out_dtype),
        grid=(G, mt, nt),
        in_specs=[
            pl.BlockSpec((tm, K), lambda g, i, j: (i, 0)),
            pl.BlockSpec((None, K, tn), lambda g, i, j: (g, 0, j)),
            pl.BlockSpec((None, 1, tn), lambda g, i, j: (g, 0, j)),
        ],
        out_specs=pl.BlockSpec((None, tm, tn), lambda g, i, j: (g, i, j)),
        compiler_params=pltpu.CompilerParams(
            dimension_semantics=("parallel", "parallel", "parallel"),
            vmem_limit_bytes=_VMEM_LIMIT),
    )(x, w, b)


def proj2(a, c, wa, wc, b, *, out_dtype=jnp.float32, tm=512, tn=512):
    """a, c: (M, K) f32; wa, wc: (G, K, N) bf16; b: (G, 1, N) f32 -> (G, M, N)."""
    M, K = a.shape
    G, _, N = wa.shape
    tm, tn, mt, nt = _proj_tiles(M, N, tm, tn)
    return pl.pallas_call(
        _proj2_kernel,
        out_shape=jax.ShapeDtypeStruct((G, M, N), out_dtype),
        grid=(G, mt, nt),
        in_specs=[
            pl.BlockSpec((tm, K), lambda g, i, j: (i, 0)),
            pl.BlockSpec((tm, K), lambda g, i, j: (i, 0)),
            pl.BlockSpec((None, K, tn), lambda g, i, j: (g, 0, j)),
            pl.BlockSpec((None, K, tn), lambda g, i, j: (g, 0, j)),
            pl.BlockSpec((None, 1, tn), lambda g, i, j: (g, 0, j)),
        ],
        out_specs=pl.BlockSpec((None, tm, tn), lambda g, i, j: (g, i, j)),
        compiler_params=pltpu.CompilerParams(
            dimension_semantics=("parallel", "parallel", "parallel"),
            vmem_limit_bytes=_VMEM_LIMIT),
    )(a, c, wa, wc, b)


# ----------------------------------------------------------------------------
# Fused bidirectional LSTM recurrence (one layer, BOTH directions per step).
# grid = (Tp // chunk,) sequential time chunks.  Each fori_loop step advances
# the forward recurrence on local time s and the reverse recurrence on local
# time chunk-1-s (of the chunk taken from the END of the sequence), so both
# serial chains finish in T steps total.  h/c state persists in VMEM scratch.
# gx already contains x_t @ W_ih^T + b_ih + b_hh (bf16) for every timestep.
# ----------------------------------------------------------------------------
def _bilstm_kernel(gxf_ref, gxr_ref, whh_ref, outf_ref, outr_ref,
                   h_scr, c_scr, *, hidden, chunk, unroll):
    @pl.when(pl.program_id(0) == 0)
    def _():
        h_scr[...] = jnp.zeros_like(h_scr)
        c_scr[...] = jnp.zeros_like(c_scr)

    # Hoisted out of the time loop: W_hh^T stays VMEM-resident (bf16).
    whh_f = whh_ref[0]            # (H, 4H)
    whh_r = whh_ref[1]

    def gate(gates, c_prev):
        i = jax.nn.sigmoid(gates[:, 0 * hidden:1 * hidden])
        f = jax.nn.sigmoid(gates[:, 1 * hidden:2 * hidden])
        g = jnp.tanh(gates[:, 2 * hidden:3 * hidden])
        o = jax.nn.sigmoid(gates[:, 3 * hidden:4 * hidden])
        c_new = f * c_prev + i * g
        h_new = o * jnp.tanh(c_new)
        return h_new, c_new

    def step(s, carry):
        hf, cf, hr, cr = carry
        tf = s
        tr = chunk - 1 - s
        gf = gxf_ref[tf].astype(jnp.float32) + jnp.dot(
            hf.astype(jnp.bfloat16), whh_f, preferred_element_type=jnp.float32)
        gr = gxr_ref[tr].astype(jnp.float32) + jnp.dot(
            hr.astype(jnp.bfloat16), whh_r, preferred_element_type=jnp.float32)
        hf_new, cf_new = gate(gf, cf)
        hr_new, cr_new = gate(gr, cr)
        outf_ref[tf] = hf_new
        outr_ref[tr] = hr_new
        return hf_new, cf_new, hr_new, cr_new

    hf, cf, hr, cr = lax.fori_loop(
        0, chunk, step, (h_scr[0], c_scr[0], h_scr[1], c_scr[1]),
        unroll=unroll)
    h_scr[0] = hf
    c_scr[0] = cf
    h_scr[1] = hr
    c_scr[1] = cr


def _pick_time_chunk(T, B, H, max_chunk=64, budget_bytes=24 * 1024 * 1024):
    """Largest chunk whose double-buffered pipeline footprint fits the budget."""
    per_t = (2 * (B * 4 * H * 2) * 2        # gx fwd+rev, bf16, 2 buffers
             + 2 * (B * H * 4) * 2)         # out fwd+rev, fp32, 2 buffers
    cap = max(1, budget_bytes // max(per_t, 1))
    return max(1, min(T, max_chunk, cap))


def bilstm(gx, w_hh_t, *, time_chunk):
    """gx: (2, Tp, B, 4H) bf16 input projections (+ both biases), original
    time order for BOTH directions.  w_hh_t: (2, H, 4H) bf16 (W_hh^T per dir).
    Returns (out_fwd, out_rev), each (Tp, B, H) fp32 in original time order
    (matches the torch bidirectional concat halves)."""
    _, Tp, B, G = gx.shape
    H = G // 4
    tc = time_chunk
    assert Tp % tc == 0
    nc = Tp // tc
    unroll = True if tc <= 8 else 4

    return pl.pallas_call(
        functools.partial(_bilstm_kernel, hidden=H, chunk=tc, unroll=unroll),
        out_shape=(jax.ShapeDtypeStruct((Tp, B, H), jnp.float32),
                   jax.ShapeDtypeStruct((Tp, B, H), jnp.float32)),
        grid=(nc,),
        in_specs=[
            # forward chunk c; reverse chunk taken from the end of the sequence
            pl.BlockSpec((None, tc, B, G), lambda c: (0, c, 0, 0)),
            pl.BlockSpec((None, tc, B, G), lambda c: (1, nc - 1 - c, 0, 0)),
            pl.BlockSpec((2, H, G), lambda c: (0, 0, 0)),
        ],
        out_specs=(
            pl.BlockSpec((tc, B, H), lambda c: (c, 0, 0)),
            pl.BlockSpec((tc, B, H), lambda c: (nc - 1 - c, 0, 0)),
        ),
        scratch_shapes=[
            pltpu.VMEM((2, B, H), jnp.float32),   # h state (fwd, rev)
            pltpu.VMEM((2, B, H), jnp.float32),   # c state (fwd, rev)
        ],
        compiler_params=pltpu.CompilerParams(
            dimension_semantics=("arbitrary",),
            vmem_limit_bytes=_VMEM_LIMIT),
    )(gx, gx, w_hh_t)


# ----------------------------------------------------------------------------
# One-time parameter packing (transpose / stack / bf16 cast / lane padding).
# Done outside the per-call forward so no weight re-materialization per step.
# ----------------------------------------------------------------------------
def pack_params(params):
    lstm = params["lstm"]
    H = lstm[0][0][1].shape[1]            # w_hh: (4H, H)
    layers = []
    for li, layer in enumerate(lstm):
        bias = jnp.stack([(b_ih + b_hh).reshape(1, 4 * H)
                          for (_, _, b_ih, b_hh) in layer]).astype(jnp.float32)
        whh = jnp.stack([w_hh.T for (_, w_hh, _, _) in layer]).astype(jnp.bfloat16)
        entry = {"whh": whh, "bias": bias}
        if li == 0:
            entry["w_in"] = jnp.stack(
                [w_ih.T for (w_ih, _, _, _) in layer]).astype(jnp.bfloat16)
        else:
            entry["wa"] = jnp.stack(
                [w_ih[:, :H].T for (w_ih, _, _, _) in layer]).astype(jnp.bfloat16)
            entry["wc"] = jnp.stack(
                [w_ih[:, H:].T for (w_ih, _, _, _) in layer]).astype(jnp.bfloat16)
        layers.append(entry)

    w_out, b_out = params["out"]          # (O, 2H), (O,)
    O = w_out.shape[0]
    O_pad = max(128, ((O + 127) // 128) * 128)   # lane-dense final store
    w_out_p = jnp.zeros((O_pad, 2 * H), jnp.float32).at[:O].set(w_out)
    b_out_p = jnp.zeros((O_pad,), jnp.float32).at[:O].set(b_out)
    return {
        "layers": layers,
        "wo_a": w_out_p[:, :H].T.astype(jnp.bfloat16)[None],   # (1, H, O_pad)
        "wo_c": w_out_p[:, H:].T.astype(jnp.bfloat16)[None],
        "bo": b_out_p.reshape(1, 1, O_pad),
    }


# ----------------------------------------------------------------------------
# Decoder forward (Pallas)
# ----------------------------------------------------------------------------
def decoder_forward(x, packed, *, out_dim, time_chunk=None):
    """x: (B, T, E) float32.  Returns (B, T, out_dim) float32."""
    B, T, E = x.shape
    H = E
    M = T * B

    tc = time_chunk or _pick_time_chunk(T, B, H)
    tc = min(tc, T)
    Tp = -(-T // tc) * tc                 # pad T up to a multiple of the chunk

    # One transpose to time-major; everything downstream stays (T, B, ...).
    xt = jnp.swapaxes(x, 0, 1).reshape(M, E)

    hf = hr = None                        # (T, B, H) fwd / rev hidden states
    for li, layer in enumerate(packed["layers"]):
        if li == 0:
            gx = proj1(xt, layer["w_in"], layer["bias"],
                       out_dtype=jnp.bfloat16)                       # (2, M, 4H)
        else:
            gx = proj2(hf.reshape(M, H), hr.reshape(M, H),
                       layer["wa"], layer["wc"], layer["bias"],
                       out_dtype=jnp.bfloat16)                       # (2, M, 4H)
        gx = gx.reshape(2, T, B, 4 * H)
        if Tp != T:
            # Zero gx rows keep h=c=0, so the padded tail is a no-op for both
            # the forward and the reverse recurrence.
            gx = jnp.pad(gx, ((0, 0), (0, Tp - T), (0, 0), (0, 0)))
        out_f, out_r = bilstm(gx, layer["whh"], time_chunk=tc)
        hf, hr = out_f[:T], out_r[:T]
        # TODO(synk): inter-layer dropout (training mode only) not implemented.

    y = proj2(hf.reshape(M, H), hr.reshape(M, H),
              packed["wo_a"], packed["wo_c"], packed["bo"],
              out_dtype=jnp.float32)                                 # (1, M, Opad)
    y = y[0, :, :out_dim].reshape(T, B, out_dim)
    return jnp.swapaxes(y, 0, 1)


# ----------------------------------------------------------------------------
# Pure-JAX fp32 reference (for correctness check only)
# ----------------------------------------------------------------------------
def decoder_reference(x, params):
    B, T, E = x.shape
    H = E
    inp = x
    for layer_params in params["lstm"]:
        dir_outs = []
        for d, (w_ih, w_hh, b_ih, b_hh) in enumerate(layer_params):
            reverse = d == 1
            seq = inp[:, ::-1] if reverse else inp

            def step(carry, xt):
                h, c = carry
                g = xt @ w_ih.T + b_ih + h @ w_hh.T + b_hh
                i, f, gg, o = jnp.split(g, 4, axis=-1)
                i = jax.nn.sigmoid(i)
                f = jax.nn.sigmoid(f)
                gg = jnp.tanh(gg)
                o = jax.nn.sigmoid(o)
                c = f * c + i * gg
                h = o * jnp.tanh(c)
                return (h, c), h

            h0 = jnp.zeros((B, H), jnp.float32)
            c0 = jnp.zeros((B, H), jnp.float32)
            _, hs = lax.scan(step, (h0, c0), jnp.swapaxes(seq, 0, 1))
            hs = jnp.swapaxes(hs, 0, 1)
            if reverse:
                hs = hs[:, ::-1]
            dir_outs.append(hs)
        inp = jnp.concatenate(dir_outs, axis=-1)
    w_out, b_out = params["out"]
    return inp @ w_out.T + b_out


# ----------------------------------------------------------------------------
# Deterministic parameter init (same shapes as nn.LSTM / nn.Linear)
# ----------------------------------------------------------------------------
def init_params(key, embedding_dim, output_dim, lstm_layers):
    H = embedding_dim
    k = 1.0 / math.sqrt(H)
    lstm = []
    for l in range(lstm_layers):
        d_in = embedding_dim if l == 0 else 2 * embedding_dim
        layer = []
        for _ in range(2):  # forward, reverse
            key, k1, k2, k3, k4 = jax.random.split(key, 5)
            w_ih = jax.random.uniform(k1, (4 * H, d_in), jnp.float32, -k, k)
            w_hh = jax.random.uniform(k2, (4 * H, H), jnp.float32, -k, k)
            b_ih = jax.random.uniform(k3, (4 * H,), jnp.float32, -k, k)
            b_hh = jax.random.uniform(k4, (4 * H,), jnp.float32, -k, k)
            layer.append((w_ih, w_hh, b_ih, b_hh))
        lstm.append(layer)
    key, k1, k2 = jax.random.split(key, 3)
    ko = 1.0 / math.sqrt(2 * H)
    w_out = jax.random.uniform(k1, (output_dim, 2 * H), jnp.float32, -ko, ko)
    b_out = jax.random.uniform(k2, (output_dim,), jnp.float32, -ko, ko)
    return {"lstm": lstm, "out": (w_out, b_out)}


if __name__ == "__main__":
    B, T, E, O, L = 2, 8, 32, 16, 2  # batch, seq, embedding_dim, output_dim, layers

    key = jax.random.PRNGKey(0)
    key, kx = jax.random.split(key)
    x = jax.random.normal(kx, (B, T, E), jnp.float32)
    params = init_params(key, embedding_dim=E, output_dim=O, lstm_layers=L)
    packed = pack_params(params)     # one-time weight packing (bf16, padded)

    fwd = jax.jit(functools.partial(decoder_forward, out_dim=O))
    out = jax.block_until_ready(fwd(x, packed))

    ref = decoder_reference(x, params)
    assert out.shape == (B, T, O)
    # MXU operands / gx storage are bf16 (fp32 accumulation & cell state), so
    # compare to the fp32 reference with a correspondingly loose tolerance.
    max_err = float(jnp.max(jnp.abs(out - ref)))
    assert jnp.allclose(out, ref, rtol=5e-2, atol=5e-2), (
        f"mismatch vs reference (max abs err {max_err:.3e})")

    print("KERNEL_OK")
</pallas_src>

<mosaic_0001>
module attributes {stable_mosaic.version = 11 : i64} {
  func.func @_proj1_kernel(%arg0: i32, %arg1: i32, %arg2: i32, %arg3: memref<16x32xf32, #tpu.memory_space<vmem>>, %arg4: memref<1x32x128xbf16, #tpu.memory_space<vmem>>, %arg5: memref<1x1x128xf32, #tpu.memory_space<vmem>>, %arg6: memref<1x16x128xbf16, #tpu.memory_space<vmem>>) attributes {dimension_semantics = [#tpu.dimension_semantics<parallel>, #tpu.dimension_semantics<parallel>, #tpu.dimension_semantics<parallel>], iteration_bounds = array<i64: 2, 1, 1>, scalar_prefetch = 0 : i64, scratch_operands = 0 : i64, tpu.core_type = #tpu.core_type<tc>, window_params = [{transform_indices = @transform_0, window_bounds = array<i64: 16, 32>}, {transform_indices = @transform_1, window_bounds = array<i64: 1, 32, 128>}, {transform_indices = @transform_2, window_bounds = array<i64: 1, 1, 128>}, {transform_indices = @transform_3, window_bounds = array<i64: 1, 16, 128>}]} {
    %c0 = arith.constant 0 : index
    %c0_0 = arith.constant 0 : index
    %0 = vector.load %arg3[%c0, %c0_0] : memref<16x32xf32, #tpu.memory_space<vmem>>, vector<16x32xf32>
    %1 = arith.truncf %0 : vector<16x32xf32> to vector<16x32xbf16>
    %c0_1 = arith.constant 0 : index
    %c0_2 = arith.constant 0 : index
    %c0_3 = arith.constant 0 : index
    %2 = vector.load %arg4[%c0_1, %c0_2, %c0_3] : memref<1x32x128xbf16, #tpu.memory_space<vmem>>, vector<1x32x128xbf16>
    %3 = vector.shape_cast %2 : vector<1x32x128xbf16> to vector<32x128xbf16>
    %cst = arith.constant dense<0.000000e+00> : vector<16x128xf32>
    %4 = tpu.matmul %1, %3, %cst {dimension_numbers = #tpu.dot_dimension_numbers<[1], [0], [0], [1], [0, 0, 1, 1], [], []>} : vector<16x32xbf16>, vector<32x128xbf16>, vector<16x128xf32> -> vector<16x128xf32>
    %c0_4 = arith.constant 0 : index
    %c0_5 = arith.constant 0 : index
    %c0_6 = arith.constant 0 : index
    %5 = vector.load %arg5[%c0_4, %c0_5, %c0_6] : memref<1x1x128xf32, #tpu.memory_space<vmem>>, vector<1x1x128xf32>
    %6 = vector.shape_cast %5 : vector<1x1x128xf32> to vector<1x128xf32>
    %7 = vector.broadcast %6 : vector<1x128xf32> to vector<16x128xf32>
    %8 = arith.addf %4, %7 : vector<16x128xf32>
    %9 = arith.truncf %8 : vector<16x128xf32> to vector<16x128xbf16>
    %c0_7 = arith.constant 0 : index
    %c0_8 = arith.constant 0 : index
    %c0_9 = arith.constant 0 : index
    %10 = vector.load %arg6[%c0_7, %c0_8, %c0_9] : memref<1x16x128xbf16, #tpu.memory_space<vmem>>, vector<1x16x128xbf16>
    %11 = vector.shape_cast %10 : vector<1x16x128xbf16> to vector<16x128xbf16>
    %12 = vector.shape_cast %9 : vector<16x128xbf16> to vector<1x16x128xbf16>
    tpu.vector_store %arg6[%c0_7, %c0_8, %c0_9], %12 {strides = array<i32>} : memref<1x16x128xbf16, #tpu.memory_space<vmem>>, vector<1x16x128xbf16>,
    return
  }
  func.func @transform_0(%arg0: i32, %arg1: i32, %arg2: i32) -> (i32, i32) {
    %c0_i32 = arith.constant 0 : i32
    %c0_i32_0 = arith.constant 0 : i32
    return %arg1, %c0_i32 : i32, i32
  }
  func.func @transform_1(%arg0: i32, %arg1: i32, %arg2: i32) -> (i32, i32, i32) {
    %c0_i32 = arith.constant 0 : i32
    %c0_i32_0 = arith.constant 0 : i32
    return %arg0, %c0_i32, %arg2 : i32, i32, i32
  }
  func.func @transform_2(%arg0: i32, %arg1: i32, %arg2: i32) -> (i32, i32, i32) {
    %c0_i32 = arith.constant 0 : i32
    %c0_i32_0 = arith.constant 0 : i32
    return %arg0, %c0_i32, %arg2 : i32, i32, i32
  }
  func.func @transform_3(%arg0: i32, %arg1: i32, %arg2: i32) -> (i32, i32, i32) {
    %c0_i32 = arith.constant 0 : i32
    return %arg0, %arg1, %arg2 : i32, i32, i32
  }
}

module attributes {stable_mosaic.version = 11 : i64} {
  func.func @_proj2_kernel(%arg0: i32, %arg1: i32, %arg2: i32, %arg3: memref<16x32xf32, #tpu.memory_space<vmem>>, %arg4: memref<16x32xf32, #tpu.memory_space<vmem>>, %arg5: memref<1x32x128xbf16, #tpu.memory_space<vmem>>, %arg6: memref<1x32x128xbf16, #tpu.memory_space<vmem>>, %arg7: memref<1x1x128xf32, #tpu.memory_space<vmem>>, %arg8: memref<1x16x128xbf16, #tpu.memory_space<vmem>>) attributes {dimension_semantics = [#tpu.dimension_semantics<parallel>, #tpu.dimension_semantics<parallel>, #tpu.dimension_semantics<parallel>], iteration_bounds = array<i64: 2, 1, 1>, scalar_prefetch = 0 : i64, scratch_operands = 0 : i64, tpu.core_type = #tpu.core_type<tc>, window_params = [{transform_indices = @transform_0, window_bounds = array<i64: 16, 32>}, {transform_indices = @transform_1, window_bounds = array<i64: 16, 32>}, {transform_indices = @transform_2, window_bounds = array<i64: 1, 32, 128>}, {transform_indices = @transform_3, window_bounds = array<i64: 1, 32, 128>}, {transform_indices = @transform_4, window_bounds = array<i64: 1, 1, 128>}, {transform_indices = @transform_5, window_bounds = array<i64: 1, 16, 128>}]} {
    %c0 = arith.constant 0 : index
    %c0_0 = arith.constant 0 : index
    %0 = vector.load %arg3[%c0, %c0_0] : memref<16x32xf32, #tpu.memory_space<vmem>>, vector<16x32xf32>
    %1 = arith.truncf %0 : vector<16x32xf32> to vector<16x32xbf16>
    %c0_1 = arith.constant 0 : index
    %c0_2 = arith.constant 0 : index
    %c0_3 = arith.constant 0 : index
    %2 = vector.load %arg5[%c0_1, %c0_2, %c0_3] : memref<1x32x128xbf16, #tpu.memory_space<vmem>>, vector<1x32x128xbf16>
    %3 = vector.shape_cast %2 : vector<1x32x128xbf16> to vector<32x128xbf16>
    %cst = arith.constant dense<0.000000e+00> : vector<16x128xf32>
    %4 = tpu.matmul %1, %3, %cst {dimension_numbers = #tpu.dot_dimension_numbers<[1], [0], [0], [1], [0, 0, 1, 1], [], []>} : vector<16x32xbf16>, vector<32x128xbf16>, vector<16x128xf32> -> vector<16x128xf32>
    %c0_4 = arith.constant 0 : index
    %c0_5 = arith.constant 0 : index
    %5 = vector.load %arg4[%c0_4, %c0_5] : memref<16x32xf32, #tpu.memory_space<vmem>>, vector<16x32xf32>
    %6 = arith.truncf %5 : vector<16x32xf32> to vector<16x32xbf16>
    %c0_6 = arith.constant 0 : index
    %c0_7 = arith.constant 0 : index
    %c0_8 = arith.constant 0 : index
    %7 = vector.load %arg6[%c0_6, %c0_7, %c0_8] : memref<1x32x128xbf16, #tpu.memory_space<vmem>>, vector<1x32x128xbf16>
    %8 = vector.shape_cast %7 : vector<1x32x128xbf16> to vector<32x128xbf16>
    %cst_9 = arith.constant dense<0.000000e+00> : vector<16x128xf32>
    %9 = tpu.matmul %6, %8, %cst_9 {dimension_numbers = #tpu.dot_dimension_numbers<[1], [0], [0], [1], [0, 0, 1, 1], [], []>} : vector<16x32xbf16>, vector<32x128xbf16>, vector<16x128xf32> -> vector<16x128xf32>
    %10 = arith.addf %4, %9 : vector<16x128xf32>
    %c0_10 = arith.constant 0 : index
    %c0_11 = arith.constant 0 : index
    %c0_12 = arith.constant 0 : index
    %11 = vector.load %arg7[%c0_10, %c0_11, %c0_12] : memref<1x1x128xf32, #tpu.memory_space<vmem>>, vector<1x1x128xf32>
    %12 = vector.shape_cast %11 : vector<1x1x128xf32> to vector<1x128xf32>
    %13 = vector.broadcast %12 : vector<1x128xf32> to vector<16x128xf32>
    %14 = arith.addf %10, %13 : vector<16x128xf32>
    %15 = arith.truncf %14 : vector<16x128xf32> to vector<16x128xbf16>
    %c0_13 = arith.constant 0 : index
    %c0_14 = arith.constant 0 : index
    %c0_15 = arith.constant 0 : index
    %16 = vector.load %arg8[%c0_13, %c0_14, %c0_15] : memref<1x16x128xbf16, #tpu.memory_space<vmem>>, vector<1x16x128xbf16>
    %17 = vector.shape_cast %16 : vector<1x16x128xbf16> to vector<16x128xbf16>
    %18 = vector.shape_cast %15 : vector<16x128xbf16> to vector<1x16x128xbf16>
    tpu.vector_store %arg8[%c0_13, %c0_14, %c0_15], %18 {strides = array<i32>} : memref<1x16x128xbf16, #tpu.memory_space<vmem>>, vector<1x16x128xbf16>,
    return
  }
  func.func @transform_0(%arg0: i32, %arg1: i32, %arg2: i32) -> (i32, i32) {
    %c0_i32 = arith.constant 0 : i32
    %c0_i32_0 = arith.constant 0 : i32
    return %arg1, %c0_i32 : i32, i32
  }
  func.func @transform_1(%arg0: i32, %arg1: i32, %arg2: i32) -> (i32, i32) {
    %c0_i32 = arith.constant 0 : i32
    %c0_i32_0 = arith.constant 0 : i32
    return %arg1, %c0_i32 : i32, i32
  }
  func.func @transform_2(%arg0: i32, %arg1: i32, %arg2: i32) -> (i32, i32, i32) {
    %c0_i32 = arith.constant 0 : i32
    %c0_i32_0 = arith.constant 0 : i32
    return %arg0, %c0_i32, %arg2 : i32, i32, i32
  }
  func.func @transform_3(%arg0: i32, %arg1: i32, %arg2: i32) -> (i32, i32, i32) {
    %c0_i32 = arith.constant 0 : i32
    %c0_i32_0 = arith.constant 0 : i32
    return %arg0, %c0_i32, %arg2 : i32, i32, i32
  }
  func.func @transform_4(%arg0: i32, %arg1: i32, %arg2: i32) -> (i32, i32, i32) {
    %c0_i32 = arith.constant 0 : i32
    %c0_i32_0 = arith.constant 0 : i32
    return %arg0, %c0_i32, %arg2 : i32, i32, i32
  }
  func.func @transform_5(%arg0: i32, %arg1: i32, %arg2: i32) -> (i32, i32, i32) {
    %c0_i32 = arith.constant 0 : i32
    return %arg0, %arg1, %arg2 : i32, i32, i32
  }
}

module attributes {stable_mosaic.version = 11 : i64} {
  func.func @_bilstm_kernel(%arg0: i32, %arg1: memref<1x8x2x128xbf16, #tpu.memory_space<vmem>>, %arg2: memref<1x8x2x128xbf16, #tpu.memory_space<vmem>>, %arg3: memref<2x32x128xbf16, #tpu.memory_space<vmem>>, %arg4: memref<8x2x32xf32, #tpu.memory_space<vmem>>, %arg5: memref<8x2x32xf32, #tpu.memory_space<vmem>>, %arg6: memref<2x2x32xf32, #tpu.memory_space<vmem>>, %arg7: memref<2x2x32xf32, #tpu.memory_space<vmem>>) attributes {dimension_semantics = [#tpu.dimension_semantics<arbitrary>], iteration_bounds = array<i64: 1>, scalar_prefetch = 0 : i64, scratch_operands = 2 : i64, tpu.core_type = #tpu.core_type<tc>, window_params = [{transform_indices = @transform_0, window_bounds = array<i64: 1, 8, 2, 128>}, {transform_indices = @transform_1, window_bounds = array<i64: 1, 8, 2, 128>}, {pipeline_mode = #tpu.pipeline_mode<synchronous>, transform_indices = @transform_2, window_bounds = array<i64: 2, 32, 128>}, {transform_indices = @transform_3, window_bounds = array<i64: 8, 2, 32>}, {transform_indices = @transform_4, window_bounds = array<i64: 8, 2, 32>}]} {
    %c0_i32 = arith.constant 0 : i32
    %0 = arith.cmpi eq, %arg0, %c0_i32 : i32
    %1 = arith.extui %0 : i1 to i32
    %c0_i32_0 = arith.constant 0 : i32
    %2 = arith.cmpi ne, %1, %c0_i32_0 : i32
    scf.if %2 {
      %cst_181 = arith.constant 0.000000e+00 : f32
      %611 = vector.broadcast %cst_181 : f32 to vector<2x2x32xf32>
      %c0_182 = arith.constant 0 : index
      %c0_183 = arith.constant 0 : index
      %c0_184 = arith.constant 0 : index
      %612 = vector.load %arg6[%c0_182, %c0_183, %c0_184] : memref<2x2x32xf32, #tpu.memory_space<vmem>>, vector<2x2x32xf32>
      tpu.vector_store %arg6[%c0_182, %c0_183, %c0_184], %611 {strides = array<i32>} : memref<2x2x32xf32, #tpu.memory_space<vmem>>, vector<2x2x32xf32>,
      %cst_185 = arith.constant 0.000000e+00 : f32
      %613 = vector.broadcast %cst_185 : f32 to vector<2x2x32xf32>
      %c0_186 = arith.constant 0 : index
      %c0_187 = arith.constant 0 : index
      %c0_188 = arith.constant 0 : index
      %614 = vector.load %arg7[%c0_186, %c0_187, %c0_188] : memref<2x2x32xf32, #tpu.memory_space<vmem>>, vector<2x2x32xf32>
      tpu.vector_store %arg7[%c0_186, %c0_187, %c0_188], %613 {strides = array<i32>} : memref<2x2x32xf32, #tpu.memory_space<vmem>>, vector<2x2x32xf32>,
    } else {
    }
    %c0 = arith.constant 0 : index
    %c0_1 = arith.constant 0 : index
    %c0_2 = arith.constant 0 : index
    %3 = vector.load %arg3[%c0, %c0_1, %c0_2] : memref<2x32x128xbf16, #tpu.memory_space<vmem>>, vector<1x32x128xbf16>
    %4 = vector.shape_cast %3 : vector<1x32x128xbf16> to vector<32x128xbf16>
    %c1 = arith.constant 1 : index
    %c0_3 = arith.constant 0 : index
    %c0_4 = arith.constant 0 : index
    %5 = vector.load %arg3[%c1, %c0_3, %c0_4] : memref<2x32x128xbf16, #tpu.memory_space<vmem>>, vector<1x32x128xbf16>
    %6 = vector.shape_cast %5 : vector<1x32x128xbf16> to vector<32x128xbf16>
    %c0_5 = arith.constant 0 : index
    %c0_6 = arith.constant 0 : index
    %c0_7 = arith.constant 0 : index
    %7 = vector.load %arg6[%c0_5, %c0_6, %c0_7] : memref<2x2x32xf32, #tpu.memory_space<vmem>>, vector<1x2x32xf32>
    %8 = vector.shape_cast %7 : vector<1x2x32xf32> to vector<2x32xf32>
    %c0_8 = arith.constant 0 : index
    %c0_9 = arith.constant 0 : index
    %c0_10 = arith.constant 0 : index
    %9 = vector.load %arg7[%c0_8, %c0_9, %c0_10] : memref<2x2x32xf32, #tpu.memory_space<vmem>>, vector<1x2x32xf32>
    %10 = vector.shape_cast %9 : vector<1x2x32xf32> to vector<2x32xf32>
    %c1_11 = arith.constant 1 : index
    %c0_12 = arith.constant 0 : index
    %c0_13 = arith.constant 0 : index
    %11 = vector.load %arg6[%c1_11, %c0_12, %c0_13] : memref<2x2x32xf32, #tpu.memory_space<vmem>>, vector<1x2x32xf32>
    %12 = vector.shape_cast %11 : vector<1x2x32xf32> to vector<2x32xf32>
    %c1_14 = arith.constant 1 : index
    %c0_15 = arith.constant 0 : index
    %c0_16 = arith.constant 0 : index
    %13 = vector.load %arg7[%c1_14, %c0_15, %c0_16] : memref<2x2x32xf32, #tpu.memory_space<vmem>>, vector<1x2x32xf32>
    %14 = vector.shape_cast %13 : vector<1x2x32xf32> to vector<2x32xf32>
    %c0_i32_17 = arith.constant 0 : i32
    %c7_i32 = arith.constant 7 : i32
    %15 = arith.subi %c7_i32, %c0_i32_17 : i32
    %c0_18 = arith.constant 0 : index
    %16 = arith.index_cast %c0_i32_17 : i32 to index
    %c0_19 = arith.constant 0 : index
    %c0_20 = arith.constant 0 : index
    %17 = vector.load %arg1[%c0_18, %16, %c0_19, %c0_20] : memref<1x8x2x128xbf16, #tpu.memory_space<vmem>>, vector<1x1x2x128xbf16>
    %18 = vector.shape_cast %17 : vector<1x1x2x128xbf16> to vector<2x128xbf16>
    %19 = arith.extf %18 : vector<2x128xbf16> to vector<2x128xf32>
    %20 = arith.truncf %8 : vector<2x32xf32> to vector<2x32xbf16>
    %cst = arith.constant dense<0.000000e+00> : vector<2x128xf32>
    %21 = tpu.matmul %20, %4, %cst {dimension_numbers = #tpu.dot_dimension_numbers<[1], [0], [0], [1], [0, 0, 1, 1], [], []>} : vector<2x32xbf16>, vector<32x128xbf16>, vector<2x128xf32> -> vector<2x128xf32>
    %22 = arith.addf %19, %21 : vector<2x128xf32>
    %c0_21 = arith.constant 0 : index
    %23 = arith.index_cast %15 : i32 to index
    %c0_22 = arith.constant 0 : index
    %c0_23 = arith.constant 0 : index
    %24 = vector.load %arg2[%c0_21, %23, %c0_22, %c0_23] : memref<1x8x2x128xbf16, #tpu.memory_space<vmem>>, vector<1x1x2x128xbf16>
    %25 = vector.shape_cast %24 : vector<1x1x2x128xbf16> to vector<2x128xbf16>
    %26 = arith.extf %25 : vector<2x128xbf16> to vector<2x128xf32>
    %27 = arith.truncf %12 : vector<2x32xf32> to vector<2x32xbf16>
    %cst_24 = arith.constant dense<0.000000e+00> : vector<2x128xf32>
    %28 = tpu.matmul %27, %6, %cst_24 {dimension_numbers = #tpu.dot_dimension_numbers<[1], [0], [0], [1], [0, 0, 1, 1], [], []>} : vector<2x32xbf16>, vector<32x128xbf16>, vector<2x128xf32> -> vector<2x128xf32>
    %29 = arith.addf %26, %28 : vector<2x128xf32>
    %30 = vector.extract_strided_slice %22 {offsets = [0, 0], sizes = [2, 32], strides = [1, 1]} : vector<2x128xf32> to vector<2x32xf32>
    %31 = arith.negf %30 : vector<2x32xf32>
    %32 = math.exp %31 : vector<2x32xf32>
    %cst_25 = arith.constant 1.000000e+00 : f32
    %33 = vector.broadcast %cst_25 : f32 to vector<2x32xf32>
    %34 = arith.addf %33, %32 : vector<2x32xf32>
    %35 = arith.divf %33, %34 : vector<2x32xf32>
    %36 = vector.extract_strided_slice %22 {offsets = [0, 32], sizes = [2, 32], strides = [1, 1]} : vector<2x128xf32> to vector<2x32xf32>
    %37 = arith.negf %36 : vector<2x32xf32>
    %38 = math.exp %37 : vector<2x32xf32>
    %cst_26 = arith.constant 1.000000e+00 : f32
    %39 = vector.broadcast %cst_26 : f32 to vector<2x32xf32>
    %40 = arith.addf %39, %38 : vector<2x32xf32>
    %41 = arith.divf %39, %40 : vector<2x32xf32>
    %42 = vector.extract_strided_slice %22 {offsets = [0, 64], sizes = [2, 32], strides = [1, 1]} : vector<2x128xf32> to vector<2x32xf32>
    %43 = math.tanh %42 : vector<2x32xf32>
    %44 = vector.extract_strided_slice %22 {offsets = [0, 96], sizes = [2, 32], strides = [1, 1]} : vector<2x128xf32> to vector<2x32xf32>
    %45 = arith.negf %44 : vector<2x32xf32>
    %46 = math.exp %45 : vector<2x32xf32>
    %cst_27 = arith.constant 1.000000e+00 : f32
    %47 = vector.broadcast %cst_27 : f32 to vector<2x32xf32>
    %48 = arith.addf %47, %46 : vector<2x32xf32>
    %49 = arith.divf %47, %48 : vector<2x32xf32>
    %50 = arith.mulf %41, %10 : vector<2x32xf32>
    %51 = arith.mulf %35, %43 : vector<2x32xf32>
    %52 = arith.addf %50, %51 : vector<2x32xf32>
    %53 = math.tanh %52 : vector<2x32xf32>
    %54 = arith.mulf %49, %53 : vector<2x32xf32>
    %55 = vector.extract_strided_slice %29 {offsets = [0, 0], sizes = [2, 32], strides = [1, 1]} : vector<2x128xf32> to vector<2x32xf32>
    %56 = arith.negf %55 : vector<2x32xf32>
    %57 = math.exp %56 : vector<2x32xf32>
    %cst_28 = arith.constant 1.000000e+00 : f32
    %58 = vector.broadcast %cst_28 : f32 to vector<2x32xf32>
    %59 = arith.addf %58, %57 : vector<2x32xf32>
    %60 = arith.divf %58, %59 : vector<2x32xf32>
    %61 = vector.extract_strided_slice %29 {offsets = [0, 32], sizes = [2, 32], strides = [1, 1]} : vector<2x128xf32> to vector<2x32xf32>
    %62 = arith.negf %61 : vector<2x32xf32>
    %63 = math.exp %62 : vector<2x32xf32>
    %cst_29 = arith.constant 1.000000e+00 : f32
    %64 = vector.broadcast %cst_29 : f32 to vector<2x32xf32>
    %65 = arith.addf %64, %63 : vector<2x32xf32>
    %66 = arith.divf %64, %65 : vector<2x32xf32>
    %67 = vector.extract_strided_slice %29 {offsets = [0, 64], sizes = [2, 32], strides = [1, 1]} : vector<2x128xf32> to vector<2x32xf32>
    %68 = math.tanh %67 : vector<2x32xf32>
    %69 = vector.extract_strided_slice %29 {offsets = [0, 96], sizes = [2, 32], strides = [1, 1]} : vector<2x128xf32> to vector<2x32xf32>
    %70 = arith.negf %69 : vector<2x32xf32>
    %71 = math.exp %70 : vector<2x32xf32>
    %cst_30 = arith.constant 1.000000e+00 : f32
    %72 = vector.broadcast %cst_30 : f32 to vector<2x32xf32>
    %73 = arith.addf %72, %71 : vector<2x32xf32>
    %74 = arith.divf %72, %73 : vector<2x32xf32>
    %75 = arith.mulf %66, %14 : vector<2x32xf32>
    %76 = arith.mulf %60, %68 : vector<2x32xf32>
    %77 = arith.addf %75, %76 : vector<2x32xf32>
    %78 = math.tanh %77 : vector<2x32xf32>
    %79 = arith.mulf %74, %78 : vector<2x32xf32>
    %80 = arith.index_cast %c0_i32_17 : i32 to index
    %c0_31 = arith.constant 0 : index
    %c0_32 = arith.constant 0 : index
    %81 = vector.load %arg4[%80, %c0_31, %c0_32] : memref<8x2x32xf32, #tpu.memory_space<vmem>>, vector<1x2x32xf32>
    %82 = vector.shape_cast %81 : vector<1x2x32xf32> to vector<2x32xf32>
    %83 = vector.shape_cast %54 : vector<2x32xf32> to vector<1x2x32xf32>
    tpu.vector_store %arg4[%80, %c0_31, %c0_32], %83 {strides = array<i32>} : memref<8x2x32xf32, #tpu.memory_space<vmem>>, vector<1x2x32xf32>,
    %84 = arith.index_cast %15 : i32 to index
    %c0_33 = arith.constant 0 : index
    %c0_34 = arith.constant 0 : index
    %85 = vector.load %arg5[%84, %c0_33, %c0_34] : memref<8x2x32xf32, #tpu.memory_space<vmem>>, vector<1x2x32xf32>
    %86 = vector.shape_cast %85 : vector<1x2x32xf32> to vector<2x32xf32>
    %87 = vector.shape_cast %79 : vector<2x32xf32> to vector<1x2x32xf32>
    tpu.vector_store %arg5[%84, %c0_33, %c0_34], %87 {strides = array<i32>} : memref<8x2x32xf32, #tpu.memory_space<vmem>>, vector<1x2x32xf32>,
    %c1_i32 = arith.constant 1 : i32
    %c7_i32_35 = arith.constant 7 : i32
    %88 = arith.subi %c7_i32_35, %c1_i32 : i32
    %c0_36 = arith.constant 0 : index
    %89 = arith.index_cast %c1_i32 : i32 to index
    %c0_37 = arith.constant 0 : index
    %c0_38 = arith.constant 0 : index
    %90 = vector.load %arg1[%c0_36, %89, %c0_37, %c0_38] : memref<1x8x2x128xbf16, #tpu.memory_space<vmem>>, vector<1x1x2x128xbf16>
    %91 = vector.shape_cast %90 : vector<1x1x2x128xbf16> to vector<2x128xbf16>
    %92 = arith.extf %91 : vector<2x128xbf16> to vector<2x128xf32>
    %93 = arith.truncf %54 : vector<2x32xf32> to vector<2x32xbf16>
    %cst_39 = arith.constant dense<0.000000e+00> : vector<2x128xf32>
    %94 = tpu.matmul %93, %4, %cst_39 {dimension_numbers = #tpu.dot_dimension_numbers<[1], [0], [0], [1], [0, 0, 1, 1], [], []>} : vector<2x32xbf16>, vector<32x128xbf16>, vector<2x128xf32> -> vector<2x128xf32>
    %95 = arith.addf %92, %94 : vector<2x128xf32>
    %c0_40 = arith.constant 0 : index
    %96 = arith.index_cast %88 : i32 to index
    %c0_41 = arith.constant 0 : index
    %c0_42 = arith.constant 0 : index
    %97 = vector.load %arg2[%c0_40, %96, %c0_41, %c0_42] : memref<1x8x2x128xbf16, #tpu.memory_space<vmem>>, vector<1x1x2x128xbf16>
    %98 = vector.shape_cast %97 : vector<1x1x2x128xbf16> to vector<2x128xbf16>
    %99 = arith.extf %98 : vector<2x128xbf16> to vector<2x128xf32>
    %100 = arith.truncf %79 : vector<2x32xf32> to vector<2x32xbf16>
    %cst_43 = arith.constant dense<0.000000e+00> : vector<2x128xf32>
    %101 = tpu.matmul %100, %6, %cst_43 {dimension_numbers = #tpu.dot_dimension_numbers<[1], [0], [0], [1], [0, 0, 1, 1], [], []>} : vector<2x32xbf16>, vector<32x128xbf16>, vector<2x128xf32> -> vector<2x128xf32>
    %102 = arith.addf %99, %101 : vector<2x128xf32>
    %103 = vector.extract_strided_slice %95 {offsets = [0, 0], sizes = [2, 32], strides = [1, 1]} : vector<2x128xf32> to vector<2x32xf32>
    %104 = arith.negf %103 : vector<2x32xf32>
    %105 = math.exp %104 : vector<2x32xf32>
    %cst_44 = arith.constant 1.000000e+00 : f32
    %106 = vector.broadcast %cst_44 : f32 to vector<2x32xf32>
    %107 = arith.addf %106, %105 : vector<2x32xf32>
    %108 = arith.divf %106, %107 : vector<2x32xf32>
    %109 = vector.extract_strided_slice %95 {offsets = [0, 32], sizes = [2, 32], strides = [1, 1]} : vector<2x128xf32> to vector<2x32xf32>
    %110 = arith.negf %109 : vector<2x32xf32>
    %111 = math.exp %110 : vector<2x32xf32>
    %cst_45 = arith.constant 1.000000e+00 : f32
    %112 = vector.broadcast %cst_45 : f32 to vector<2x32xf32>
    %113 = arith.addf %112, %111 : vector<2x32xf32>
    %114 = arith.divf %112, %113 : vector<2x32xf32>
    %115 = vector.extract_strided_slice %95 {offsets = [0, 64], sizes = [2, 32], strides = [1, 1]} : vector<2x128xf32> to vector<2x32xf32>
    %116 = math.tanh %115 : vector<2x32xf32>
    %117 = vector.extract_strided_slice %95 {offsets = [0, 96], sizes = [2, 32], strides = [1, 1]} : vector<2x128xf32> to vector<2x32xf32>
    %118 = arith.negf %117 : vector<2x32xf32>
    %119 = math.exp %118 : vector<2x32xf32>
    %cst_46 = arith.constant 1.000000e+00 : f32
    %120 = vector.broadcast %cst_46 : f32 to vector<2x32xf32>
    %121 = arith.addf %120, %119 : vector<2x32xf32>
    %122 = arith.divf %120, %121 : vector<2x32xf32>
    %123 = arith.mulf %114, %52 : vector<2x32xf32>
    %124 = arith.mulf %108, %116 : vector<2x32xf32>
    %125 = arith.addf %123, %124 : vector<2x32xf32>
    %126 = math.tanh %125 : vector<2x32xf32>
    %127 = arith.mulf %122, %126 : vector<2x32xf32>
    %128 = vector.extract_strided_slice %102 {offsets = [0, 0], sizes = [2, 32], strides = [1, 1]} : vector<2x128xf32> to vector<2x32xf32>
    %129 = arith.negf %128 : vector<2x32xf32>
    %130 = math.exp %129 : vector<2x32xf32>
    %cst_47 = arith.constant 1.000000e+00 : f32
    %131 = vector.broadcast %cst_47 : f32 to vector<2x32xf32>
    %132 = arith.addf %131, %130 : vector<2x32xf32>
    %133 = arith.divf %131, %132 : vector<2x32xf32>
    %134 = vector.extract_strided_slice %102 {offsets = [0, 32], sizes = [2, 32], strides = [1, 1]} : vector<2x128xf32> to vector<2x32xf32>
    %135 = arith.negf %134 : vector<2x32xf32>
    %136 = math.exp %135 : vector<2x32xf32>
    %cst_48 = arith.constant 1.000000e+00 : f32
    %137 = vector.broadcast %cst_48 : f32 to vector<2x32xf32>
    %138 = arith.addf %137, %136 : vector<2x32xf32>
    %139 = arith.divf %137, %138 : vector<2x32xf32>
    %140 = vector.extract_strided_slice %102 {offsets = [0, 64], sizes = [2, 32], strides = [1, 1]} : vector<2x128xf32> to vector<2x32xf32>
    %141 = math.tanh %140 : vector<2x32xf32>
    %142 = vector.extract_strided_slice %102 {offsets = [0, 96], sizes = [2, 32], strides = [1, 1]} : vector<2x128xf32> to vector<2x32xf32>
    %143 = arith.negf %142 : vector<2x32xf32>
    %144 = math.exp %143 : vector<2x32xf32>
    %cst_49 = arith.constant 1.000000e+00 : f32
    %145 = vector.broadcast %cst_49 : f32 to vector<2x32xf32>
    %146 = arith.addf %145, %144 : vector<2x32xf32>
    %147 = arith.divf %145, %146 : vector<2x32xf32>
    %148 = arith.mulf %139, %77 : vector<2x32xf32>
    %149 = arith.mulf %133, %141 : vector<2x32xf32>
    %150 = arith.addf %148, %149 : vector<2x32xf32>
    %151 = math.tanh %150 : vector<2x32xf32>
    %152 = arith.mulf %147, %151 : vector<2x32xf32>
    %153 = arith.index_cast %c1_i32 : i32 to index
    %c0_50 = arith.constant 0 : index
    %c0_51 = arith.constant 0 : index
    %154 = vector.load %arg4[%153, %c0_50, %c0_51] : memref<8x2x32xf32, #tpu.memory_space<vmem>>, vector<1x2x32xf32>
    %155 = vector.shape_cast %154 : vector<1x2x32xf32> to vector<2x32xf32>
    %156 = vector.shape_cast %127 : vector<2x32xf32> to vector<1x2x32xf32>
    tpu.vector_store %arg4[%153, %c0_50, %c0_51], %156 {strides = array<i32>} : memref<8x2x32xf32, #tpu.memory_space<vmem>>, vector<1x2x32xf32>,
    %157 = arith.index_cast %88 : i32 to index
    %c0_52 = arith.constant 0 : index
    %c0_53 = arith.constant 0 : index
    %158 = vector.load %arg5[%157, %c0_52, %c0_53] : memref<8x2x32xf32, #tpu.memory_space<vmem>>, vector<1x2x32xf32>
    %159 = vector.shape_cast %158 : vector<1x2x32xf32> to vector<2x32xf32>
    %160 = vector.shape_cast %152 : vector<2x32xf32> to vector<1x2x32xf32>
    tpu.vector_store %arg5[%157, %c0_52, %c0_53], %160 {strides = array<i32>} : memref<8x2x32xf32, #tpu.memory_space<vmem>>, vector<1x2x32xf32>,
    %c2_i32 = arith.constant 2 : i32
    %c7_i32_54 = arith.constant 7 : i32
    %161 = arith.subi %c7_i32_54, %c2_i32 : i32
    %c0_55 = arith.constant 0 : index
    %162 = arith.index_cast %c2_i32 : i32 to index
    %c0_56 = arith.constant 0 : index
    %c0_57 = arith.constant 0 : index
    %163 = vector.load %arg1[%c0_55, %162, %c0_56, %c0_57] : memref<1x8x2x128xbf16, #tpu.memory_space<vmem>>, vector<1x1x2x128xbf16>
    %164 = vector.shape_cast %163 : vector<1x1x2x128xbf16> to vector<2x128xbf16>
    %165 = arith.extf %164 : vector<2x128xbf16> to vector<2x128xf32>
    %166 = arith.truncf %127 : vector<2x32xf32> to vector<2x32xbf16>
    %cst_58 = arith.constant dense<0.000000e+00> : vector<2x128xf32>
    %167 = tpu.matmul %166, %4, %cst_58 {dimension_numbers = #tpu.dot_dimension_numbers<[1], [0], [0], [1], [0, 0, 1, 1], [], []>} : vector<2x32xbf16>, vector<32x128xbf16>, vector<2x128xf32> -> vector<2x128xf32>
    %168 = arith.addf %165, %167 : vector<2x128xf32>
    %c0_59 = arith.constant 0 : index
    %169 = arith.index_cast %161 : i32 to index
    %c0_60 = arith.constant 0 : index
    %c0_61 = arith.constant 0 : index
    %170 = vector.load %arg2[%c0_59, %169, %c0_60, %c0_61] : memref<1x8x2x128xbf16, #tpu.memory_space<vmem>>, vector<1x1x2x128xbf16>
    %171 = vector.shape_cast %170 : vector<1x1x2x128xbf16> to vector<2x128xbf16>
    %172 = arith.extf %171 : vector<2x128xbf16> to vector<2x128xf32>
    %173 = arith.truncf %152 : vector<2x32xf32> to vector<2x32xbf16>
    %cst_62 = arith.constant dense<0.000000e+00> : vector<2x128xf32>
    %174 = tpu.matmul %173, %6, %cst_62 {dimension_numbers = #tpu.dot_dimension_numbers<[1], [0], [0], [1], [0, 0, 1, 1], [], []>} : vector<2x32xbf16>, vector<32x128xbf16>, vector<2x128xf32> -> vector<2x128xf32>
    %175 = arith.addf %172, %174 : vector<2x128xf32>
    %176 = vector.extract_strided_slice %168 {offsets = [0, 0], sizes = [2, 32], strides = [1, 1]} : vector<2x128xf32> to vector<2x32xf32>
    %177 = arith.negf %176 : vector<2x32xf32>
    %178 = math.exp %177 : vector<2x32xf32>
    %cst_63 = arith.constant 1.000000e+00 : f32
    %179 = vector.broadcast %cst_63 : f32 to vector<2x32xf32>
    %180 = arith.addf %179, %178 : vector<2x32xf32>
    %181 = arith.divf %179, %180 : vector<2x32xf32>
    %182 = vector.extract_strided_slice %168 {offsets = [0, 32], sizes = [2, 32], strides = [1, 1]} : vector<2x128xf32> to vector<2x32xf32>
    %183 = arith.negf %182 : vector<2x32xf32>
    %184 = math.exp %183 : vector<2x32xf32>
    %cst_64 = arith.constant 1.000000e+00 : f32
    %185 = vector.broadcast %cst_64 : f32 to vector<2x32xf32>
    %186 = arith.addf %185, %184 : vector<2x32xf32>
    %187 = arith.divf %185, %186 : vector<2x32xf32>
    %188 = vector.extract_strided_slice %168 {offsets = [0, 64], sizes = [2, 32], strides = [1, 1]} : vector<2x128xf32> to vector<2x32xf32>
    %189 = math.tanh %188 : vector<2x32xf32>
    %190 = vector.extract_strided_slice %168 {offsets = [0, 96], sizes = [2, 32], strides = [1, 1]} : vector<2x128xf32> to vector<2x32xf32>
    %191 = arith.negf %190 : vector<2x32xf32>
    %192 = math.exp %191 : vector<2x32xf32>
    %cst_65 = arith.constant 1.000000e+00 : f32
    %193 = vector.broadcast %cst_65 : f32 to vector<2x32xf32>
    %194 = arith.addf %193, %192 : vector<2x32xf32>
    %195 = arith.divf %193, %194 : vector<2x32xf32>
    %196 = arith.mulf %187, %125 : vector<2x32xf32>
    %197 = arith.mulf %181, %189 : vector<2x32xf32>
    %198 = arith.addf %196, %197 : vector<2x32xf32>
    %199 = math.tanh %198 : vector<2x32xf32>
    %200 = arith.mulf %195, %199 : vector<2x32xf32>
    %201 = vector.extract_strided_slice %175 {offsets = [0, 0], sizes = [2, 32], strides = [1, 1]} : vector<2x128xf32> to vector<2x32xf32>
    %202 = arith.negf %201 : vector<2x32xf32>
    %203 = math.exp %202 : vector<2x32xf32>
    %cst_66 = arith.constant 1.000000e+00 : f32
    %204 = vector.broadcast %cst_66 : f32 to vector<2x32xf32>
    %205 = arith.addf %204, %203 : vector<2x32xf32>
    %206 = arith.divf %204, %205 : vector<2x32xf32>
    %207 = vector.extract_strided_slice %175 {offsets = [0, 32], sizes = [2, 32], strides = [1, 1]} : vector<2x128xf32> to vector<2x32xf32>
    %208 = arith.negf %207 : vector<2x32xf32>
    %209 = math.exp %208 : vector<2x32xf32>
    %cst_67 = arith.constant 1.000000e+00 : f32
    %210 = vector.broadcast %cst_67 : f32 to vector<2x32xf32>
    %211 = arith.addf %210, %209 : vector<2x32xf32>
    %212 = arith.divf %210, %211 : vector<2x32xf32>
    %213 = vector.extract_strided_slice %175 {offsets = [0, 64], sizes = [2, 32], strides = [1, 1]} : vector<2x128xf32> to vector<2x32xf32>
    %214 = math.tanh %213 : vector<2x32xf32>
    %215 = vector.extract_strided_slice %175 {offsets = [0, 96], sizes = [2, 32], strides = [1, 1]} : vector<2x128xf32> to vector<2x32xf32>
    %216 = arith.negf %215 : vector<2x32xf32>
    %217 = math.exp %216 : vector<2x32xf32>
    %cst_68 = arith.constant 1.000000e+00 : f32
    %218 = vector.broadcast %cst_68 : f32 to vector<2x32xf32>
    %219 = arith.addf %218, %217 : vector<2x32xf32>
    %220 = arith.divf %218, %219 : vector<2x32xf32>
    %221 = arith.mulf %212, %150 : vector<2x32xf32>
    %222 = arith.mulf %206, %214 : vector<2x32xf32>
    %223 = arith.addf %221, %222 : vector<2x32xf32>
    %224 = math.tanh %223 : vector<2x32xf32>
    %225 = arith.mulf %220, %224 : vector<2x32xf32>
    %226 = arith.index_cast %c2_i32 : i32 to index
    %c0_69 = arith.constant 0 : index
    %c0_70 = arith.constant 0 : index
    %227 = vector.load %arg4[%226, %c0_69, %c0_70] : memref<8x2x32xf32, #tpu.memory_space<vmem>>, vector<1x2x32xf32>
    %228 = vector.shape_cast %227 : vector<1x2x32xf32> to vector<2x32xf32>
    %229 = vector.shape_cast %200 : vector<2x32xf32> to vector<1x2x32xf32>
    tpu.vector_store %arg4[%226, %c0_69, %c0_70], %229 {strides = array<i32>} : memref<8x2x32xf32, #tpu.memory_space<vmem>>, vector<1x2x32xf32>,
    %230 = arith.index_cast %161 : i32 to index
    %c0_71 = arith.constant 0 : index
    %c0_72 = arith.constant 0 : index
    %231 = vector.load %arg5[%230, %c0_71, %c0_72] : memref<8x2x32xf32, #tpu.memory_space<vmem>>, vector<1x2x32xf32>
    %232 = vector.shape_cast %231 : vector<1x2x32xf32> to vector<2x32xf32>
    %233 = vector.shape_cast %225 : vector<2x32xf32> to vector<1x2x32xf32>
    tpu.vector_store %arg5[%230, %c0_71, %c0_72], %233 {strides = array<i32>} : memref<8x2x32xf32, #tpu.memory_space<vmem>>, vector<1x2x32xf32>,
    %c3_i32 = arith.constant 3 : i32
    %c7_i32_73 = arith.constant 7 : i32
    %234 = arith.subi %c7_i32_73, %c3_i32 : i32
    %c0_74 = arith.constant 0 : index
    %235 = arith.index_cast %c3_i32 : i32 to index
    %c0_75 = arith.constant 0 : index
    %c0_76 = arith.constant 0 : index
    %236 = vector.load %arg1[%c0_74, %235, %c0_75, %c0_76] : memref<1x8x2x128xbf16, #tpu.memory_space<vmem>>, vector<1x1x2x128xbf16>
    %237 = vector.shape_cast %236 : vector<1x1x2x128xbf16> to vector<2x128xbf16>
    %238 = arith.extf %237 : vector<2x128xbf16> to vector<2x128xf32>
    %239 = arith.truncf %200 : vector<2x32xf32> to vector<2x32xbf16>
    %cst_77 = arith.constant dense<0.000000e+00> : vector<2x128xf32>
    %240 = tpu.matmul %239, %4, %cst_77 {dimension_numbers = #tpu.dot_dimension_numbers<[1], [0], [0], [1], [0, 0, 1, 1], [], []>} : vector<2x32xbf16>, vector<32x128xbf16>, vector<2x128xf32> -> vector<2x128xf32>
    %241 = arith.addf %238, %240 : vector<2x128xf32>
    %c0_78 = arith.constant 0 : index
    %242 = arith.index_cast %234 : i32 to index
    %c0_79 = arith.constant 0 : index
    %c0_80 = arith.constant 0 : index
    %243 = vector.load %arg2[%c0_78, %242, %c0_79, %c0_80] : memref<1x8x2x128xbf16, #tpu.memory_space<vmem>>, vector<1x1x2x128xbf16>
    %244 = vector.shape_cast %243 : vector<1x1x2x128xbf16> to vector<2x128xbf16>
    %245 = arith.extf %244 : vector<2x128xbf16> to vector<2x128xf32>
    %246 = arith.truncf %225 : vector<2x32xf32> to vector<2x32xbf16>
    %cst_81 = arith.constant dense<0.000000e+00> : vector<2x128xf32>
    %247 = tpu.matmul %246, %6, %cst_81 {dimension_numbers = #tpu.dot_dimension_numbers<[1], [0], [0], [1], [0, 0, 1, 1], [], []>} : vector<2x32xbf16>, vector<32x128xbf16>, vector<2x128xf32> -> vector<2x128xf32>
    %248 = arith.addf %245, %247 : vector<2x128xf32>
    %249 = vector.extract_strided_slice %241 {offsets = [0, 0], sizes = [2, 32], strides = [1, 1]} : vector<2x128xf32> to vector<2x32xf32>
    %250 = arith.negf %249 : vector<2x32xf32>
    %251 = math.exp %250 : vector<2x32xf32>
    %cst_82 = arith.constant 1.000000e+00 : f32
    %252 = vector.broadcast %cst_82 : f32 to vector<2x32xf32>
    %253 = arith.addf %252, %251 : vector<2x32xf32>
    %254 = arith.divf %252, %253 : vector<2x32xf32>
    %255 = vector.extract_strided_slice %241 {offsets = [0, 32], sizes = [2, 32], strides = [1, 1]} : vector<2x128xf32> to vector<2x32xf32>
    %256 = arith.negf %255 : vector<2x32xf32>
    %257 = math.exp %256 : vector<2x32xf32>
    %cst_83 = arith.constant 1.000000e+00 : f32
    %258 = vector.broadcast %cst_83 : f32 to vector<2x32xf32>
    %259 = arith.addf %258, %257 : vector<2x32xf32>
    %260 = arith.divf %258, %259 : vector<2x32xf32>
    %261 = vector.extract_strided_slice %241 {offsets = [0, 64], sizes = [2, 32], strides = [1, 1]} : vector<2x128xf32> to vector<2x32xf32>
    %262 = math.tanh %261 : vector<2x32xf32>
    %263 = vector.extract_strided_slice %241 {offsets = [0, 96], sizes = [2, 32], strides = [1, 1]} : vector<2x128xf32> to vector<2x32xf32>
    %264 = arith.negf %263 : vector<2x32xf32>
    %265 = math.exp %264 : vector<2x32xf32>
    %cst_84 = arith.constant 1.000000e+00 : f32
    %266 = vector.broadcast %cst_84 : f32 to vector<2x32xf32>
    %267 = arith.addf %266, %265 : vector<2x32xf32>
    %268 = arith.divf %266, %267 : vector<2x32xf32>
    %269 = arith.mulf %260, %198 : vector<2x32xf32>
    %270 = arith.mulf %254, %262 : vector<2x32xf32>
    %271 = arith.addf %269, %270 : vector<2x32xf32>
    %272 = math.tanh %271 : vector<2x32xf32>
    %273 = arith.mulf %268, %272 : vector<2x32xf32>
    %274 = vector.extract_strided_slice %248 {offsets = [0, 0], sizes = [2, 32], strides = [1, 1]} : vector<2x128xf32> to vector<2x32xf32>
    %275 = arith.negf %274 : vector<2x32xf32>
    %276 = math.exp %275 : vector<2x32xf32>
    %cst_85 = arith.constant 1.000000e+00 : f32
    %277 = vector.broadcast %cst_85 : f32 to vector<2x32xf32>
    %278 = arith.addf %277, %276 : vector<2x32xf32>
    %279 = arith.divf %277, %278 : vector<2x32xf32>
    %280 = vector.extract_strided_slice %248 {offsets = [0, 32], sizes = [2, 32], strides = [1, 1]} : vector<2x128xf32> to vector<2x32xf32>
    %281 = arith.negf %280 : vector<2x32xf32>
    %282 = math.exp %281 : vector<2x32xf32>
    %cst_86 = arith.constant 1.000000e+00 : f32
    %283 = vector.broadcast %cst_86 : f32 to vector<2x32xf32>
    %284 = arith.addf %283, %282 : vector<2x32xf32>
    %285 = arith.divf %283, %284 : vector<2x32xf32>
    %286 = vector.extract_strided_slice %248 {offsets = [0, 64], sizes = [2, 32], strides = [1, 1]} : vector<2x128xf32> to vector<2x32xf32>
    %287 = math.tanh %286 : vector<2x32xf32>
    %288 = vector.extract_strided_slice %248 {offsets = [0, 96], sizes = [2, 32], strides = [1, 1]} : vector<2x128xf32> to vector<2x32xf32>
    %289 = arith.negf %288 : vector<2x32xf32>
    %290 = math.exp %289 : vector<2x32xf32>
    %cst_87 = arith.constant 1.000000e+00 : f32
    %291 = vector.broadcast %cst_87 : f32 to vector<2x32xf32>
    %292 = arith.addf %291, %290 : vector<2x32xf32>
    %293 = arith.divf %291, %292 : vector<2x32xf32>
    %294 = arith.mulf %285, %223 : vector<2x32xf32>
    %295 = arith.mulf %279, %287 : vector<2x32xf32>
    %296 = arith.addf %294, %295 : vector<2x32xf32>
    %297 = math.tanh %296 : vector<2x32xf32>
    %298 = arith.mulf %293, %297 : vector<2x32xf32>
    %299 = arith.index_cast %c3_i32 : i32 to index
    %c0_88 = arith.constant 0 : index
    %c0_89 = arith.constant 0 : index
    %300 = vector.load %arg4[%299, %c0_88, %c0_89] : memref<8x2x32xf32, #tpu.memory_space<vmem>>, vector<1x2x32xf32>
    %301 = vector.shape_cast %300 : vector<1x2x32xf32> to vector<2x32xf32>
    %302 = vector.shape_cast %273 : vector<2x32xf32> to vector<1x2x32xf32>
    tpu.vector_store %arg4[%299, %c0_88, %c0_89], %302 {strides = array<i32>} : memref<8x2x32xf32, #tpu.memory_space<vmem>>, vector<1x2x32xf32>,
    %303 = arith.index_cast %234 : i32 to index
    %c0_90 = arith.constant 0 : index
    %c0_91 = arith.constant 0 : index
    %304 = vector.load %arg5[%303, %c0_90, %c0_91] : memref<8x2x32xf32, #tpu.memory_space<vmem>>, vector<1x2x32xf32>
    %305 = vector.shape_cast %304 : vector<1x2x32xf32> to vector<2x32xf32>
    %306 = vector.shape_cast %298 : vector<2x32xf32> to vector<1x2x32xf32>
    tpu.vector_store %arg5[%303, %c0_90, %c0_91], %306 {strides = array<i32>} : memref<8x2x32xf32, #tpu.memory_space<vmem>>, vector<1x2x32xf32>,
    %c4_i32 = arith.constant 4 : i32
    %c7_i32_92 = arith.constant 7 : i32
    %307 = arith.subi %c7_i32_92, %c4_i32 : i32
    %c0_93 = arith.constant 0 : index
    %308 = arith.index_cast %c4_i32 : i32 to index
    %c0_94 = arith.constant 0 : index
    %c0_95 = arith.constant 0 : index
    %309 = vector.load %arg1[%c0_93, %308, %c0_94, %c0_95] : memref<1x8x2x128xbf16, #tpu.memory_space<vmem>>, vector<1x1x2x128xbf16>
    %310 = vector.shape_cast %309 : vector<1x1x2x128xbf16> to vector<2x128xbf16>
    %311 = arith.extf %310 : vector<2x128xbf16> to vector<2x128xf32>
    %312 = arith.truncf %273 : vector<2x32xf32> to vector<2x32xbf16>
    %cst_96 = arith.constant dense<0.000000e+00> : vector<2x128xf32>
    %313 = tpu.matmul %312, %4, %cst_96 {dimension_numbers = #tpu.dot_dimension_numbers<[1], [0], [0], [1], [0, 0, 1, 1], [], []>} : vector<2x32xbf16>, vector<32x128xbf16>, vector<2x128xf32> -> vector<2x128xf32>
    %314 = arith.addf %311, %313 : vector<2x128xf32>
    %c0_97 = arith.constant 0 : index
    %315 = arith.index_cast %307 : i32 to index
    %c0_98 = arith.constant 0 : index
    %c0_99 = arith.constant 0 : index
    %316 = vector.load %arg2[%c0_97, %315, %c0_98, %c0_99] : memref<1x8x2x128xbf16, #tpu.memory_space<vmem>>, vector<1x1x2x128xbf16>
    %317 = vector.shape_cast %316 : vector<1x1x2x128xbf16> to vector<2x128xbf16>
    %318 = arith.extf %317 : vector<2x128xbf16> to vector<2x128xf32>
    %319 = arith.truncf %298 : vector<2x32xf32> to vector<2x32xbf16>
    %cst_100 = arith.constant dense<0.000000e+00> : vector<2x128xf32>
    %320 = tpu.matmul %319, %6, %cst_100 {dimension_numbers = #tpu.dot_dimension_numbers<[1], [0], [0], [1], [0, 0, 1, 1], [], []>} : vector<2x32xbf16>, vector<32x128xbf16>, vector<2x128xf32> -> vector<2x128xf32>
    %321 = arith.addf %318, %320 : vector<2x128xf32>
    %322 = vector.extract_strided_slice %314 {offsets = [0, 0], sizes = [2, 32], strides = [1, 1]} : vector<2x128xf32> to vector<2x32xf32>
    %323 = arith.negf %322 : vector<2x32xf32>
    %324 = math.exp %323 : vector<2x32xf32>
    %cst_101 = arith.constant 1.000000e+00 : f32
    %325 = vector.broadcast %cst_101 : f32 to vector<2x32xf32>
    %326 = arith.addf %325, %324 : vector<2x32xf32>
    %327 = arith.divf %325, %326 : vector<2x32xf32>
    %328 = vector.extract_strided_slice %314 {offsets = [0, 32], sizes = [2, 32], strides = [1, 1]} : vector<2x128xf32> to vector<2x32xf32>
    %329 = arith.negf %328 : vector<2x32xf32>
    %330 = math.exp %329 : vector<2x32xf32>
    %cst_102 = arith.constant 1.000000e+00 : f32
    %331 = vector.broadcast %cst_102 : f32 to vector<2x32xf32>
    %332 = arith.addf %331, %330 : vector<2x32xf32>
    %333 = arith.divf %331, %332 : vector<2x32xf32>
    %334 = vector.extract_strided_slice %314 {offsets = [0, 64], sizes = [2, 32], strides = [1, 1]} : vector<2x128xf32> to vector<2x32xf32>
    %335 = math.tanh %334 : vector<2x32xf32>
    %336 = vector.extract_strided_slice %314 {offsets = [0, 96], sizes = [2, 32], strides = [1, 1]} : vector<2x128xf32> to vector<2x32xf32>
    %337 = arith.negf %336 : vector<2x32xf32>
    %338 = math.exp %337 : vector<2x32xf32>
    %cst_103 = arith.constant 1.000000e+00 : f32
    %339 = vector.broadcast %cst_103 : f32 to vector<2x32xf32>
    %340 = arith.addf %339, %338 : vector<2x32xf32>
    %341 = arith.divf %339, %340 : vector<2x32xf32>
    %342 = arith.mulf %333, %271 : vector<2x32xf32>
    %343 = arith.mulf %327, %335 : vector<2x32xf32>
    %344 = arith.addf %342, %343 : vector<2x32xf32>
    %345 = math.tanh %344 : vector<2x32xf32>
    %346 = arith.mulf %341, %345 : vector<2x32xf32>
    %347 = vector.extract_strided_slice %321 {offsets = [0, 0], sizes = [2, 32], strides = [1, 1]} : vector<2x128xf32> to vector<2x32xf32>
    %348 = arith.negf %347 : vector<2x32xf32>
    %349 = math.exp %348 : vector<2x32xf32>
    %cst_104 = arith.constant 1.000000e+00 : f32
    %350 = vector.broadcast %cst_104 : f32 to vector<2x32xf32>
    %351 = arith.addf %350, %349 : vector<2x32xf32>
    %352 = arith.divf %350, %351 : vector<2x32xf32>
    %353 = vector.extract_strided_slice %321 {offsets = [0, 32], sizes = [2, 32], strides = [1, 1]} : vector<2x128xf32> to vector<2x32xf32>
    %354 = arith.negf %353 : vector<2x32xf32>
    %355 = math.exp %354 : vector<2x32xf32>
    %cst_105 = arith.constant 1.000000e+00 : f32
    %356 = vector.broadcast %cst_105 : f32 to vector<2x32xf32>
    %357 = arith.addf %356, %355 : vector<2x32xf32>
    %358 = arith.divf %356, %357 : vector<2x32xf32>
    %359 = vector.extract_strided_slice %321 {offsets = [0, 64], sizes = [2, 32], strides = [1, 1]} : vector<2x128xf32> to vector<2x32xf32>
    %360 = math.tanh %359 : vector<2x32xf32>
    %361 = vector.extract_strided_slice %321 {offsets = [0, 96], sizes = [2, 32], strides = [1, 1]} : vector<2x128xf32> to vector<2x32xf32>
    %362 = arith.negf %361 : vector<2x32xf32>
    %363 = math.exp %362 : vector<2x32xf32>
    %cst_106 = arith.constant 1.000000e+00 : f32
    %364 = vector.broadcast %cst_106 : f32 to vector<2x32xf32>
    %365 = arith.addf %364, %363 : vector<2x32xf32>
    %366 = arith.divf %364, %365 : vector<2x32xf32>
    %367 = arith.mulf %358, %296 : vector<2x32xf32>
    %368 = arith.mulf %352, %360 : vector<2x32xf32>
    %369 = arith.addf %367, %368 : vector<2x32xf32>
    %370 = math.tanh %369 : vector<2x32xf32>
    %371 = arith.mulf %366, %370 : vector<2x32xf32>
    %372 = arith.index_cast %c4_i32 : i32 to index
    %c0_107 = arith.constant 0 : index
    %c0_108 = arith.constant 0 : index
    %373 = vector.load %arg4[%372, %c0_107, %c0_108] : memref<8x2x32xf32, #tpu.memory_space<vmem>>, vector<1x2x32xf32>
    %374 = vector.shape_cast %373 : vector<1x2x32xf32> to vector<2x32xf32>
    %375 = vector.shape_cast %346 : vector<2x32xf32> to vector<1x2x32xf32>
    tpu.vector_store %arg4[%372, %c0_107, %c0_108], %375 {strides = array<i32>} : memref<8x2x32xf32, #tpu.memory_space<vmem>>, vector<1x2x32xf32>,
    %376 = arith.index_cast %307 : i32 to index
    %c0_109 = arith.constant 0 : index
    %c0_110 = arith.constant 0 : index
    %377 = vector.load %arg5[%376, %c0_109, %c0_110] : memref<8x2x32xf32, #tpu.memory_space<vmem>>, vector<1x2x32xf32>
    %378 = vector.shape_cast %377 : vector<1x2x32xf32> to vector<2x32xf32>
    %379 = vector.shape_cast %371 : vector<2x32xf32> to vector<1x2x32xf32>
    tpu.vector_store %arg5[%376, %c0_109, %c0_110], %379 {strides = array<i32>} : memref<8x2x32xf32, #tpu.memory_space<vmem>>, vector<1x2x32xf32>,
    %c5_i32 = arith.constant 5 : i32
    %c7_i32_111 = arith.constant 7 : i32
    %380 = arith.subi %c7_i32_111, %c5_i32 : i32
    %c0_112 = arith.constant 0 : index
    %381 = arith.index_cast %c5_i32 : i32 to index
    %c0_113 = arith.constant 0 : index
    %c0_114 = arith.constant 0 : index
    %382 = vector.load %arg1[%c0_112, %381, %c0_113, %c0_114] : memref<1x8x2x128xbf16, #tpu.memory_space<vmem>>, vector<1x1x2x128xbf16>
    %383 = vector.shape_cast %382 : vector<1x1x2x128xbf16> to vector<2x128xbf16>
    %384 = arith.extf %383 : vector<2x128xbf16> to vector<2x128xf32>
    %385 = arith.truncf %346 : vector<2x32xf32> to vector<2x32xbf16>
    %cst_115 = arith.constant dense<0.000000e+00> : vector<2x128xf32>
    %386 = tpu.matmul %385, %4, %cst_115 {dimension_numbers = #tpu.dot_dimension_numbers<[1], [0], [0], [1], [0, 0, 1, 1], [], []>} : vector<2x32xbf16>, vector<32x128xbf16>, vector<2x128xf32> -> vector<2x128xf32>
    %387 = arith.addf %384, %386 : vector<2x128xf32>
    %c0_116 = arith.constant 0 : index
    %388 = arith.index_cast %380 : i32 to index
    %c0_117 = arith.constant 0 : index
    %c0_118 = arith.constant 0 : index
    %389 = vector.load %arg2[%c0_116, %388, %c0_117, %c0_118] : memref<1x8x2x128xbf16, #tpu.memory_space<vmem>>, vector<1x1x2x128xbf16>
    %390 = vector.shape_cast %389 : vector<1x1x2x128xbf16> to vector<2x128xbf16>
    %391 = arith.extf %390 : vector<2x128xbf16> to vector<2x128xf32>
    %392 = arith.truncf %371 : vector<2x32xf32> to vector<2x32xbf16>
    %cst_119 = arith.constant dense<0.000000e+00> : vector<2x128xf32>
    %393 = tpu.matmul %392, %6, %cst_119 {dimension_numbers = #tpu.dot_dimension_numbers<[1], [0], [0], [1], [0, 0, 1, 1], [], []>} : vector<2x32xbf16>, vector<32x128xbf16>, vector<2x128xf32> -> vector<2x128xf32>
    %394 = arith.addf %391, %393 : vector<2x128xf32>
    %395 = vector.extract_strided_slice %387 {offsets = [0, 0], sizes = [2, 32], strides = [1, 1]} : vector<2x128xf32> to vector<2x32xf32>
    %396 = arith.negf %395 : vector<2x32xf32>
    %397 = math.exp %396 : vector<2x32xf32>
    %cst_120 = arith.constant 1.000000e+00 : f32
    %398 = vector.broadcast %cst_120 : f32 to vector<2x32xf32>
    %399 = arith.addf %398, %397 : vector<2x32xf32>
    %400 = arith.divf %398, %399 : vector<2x32xf32>
    %401 = vector.extract_strided_slice %387 {offsets = [0, 32], sizes = [2, 32], strides = [1, 1]} : vector<2x128xf32> to vector<2x32xf32>
    %402 = arith.negf %401 : vector<2x32xf32>
    %403 = math.exp %402 : vector<2x32xf32>
    %cst_121 = arith.constant 1.000000e+00 : f32
    %404 = vector.broadcast %cst_121 : f32 to vector<2x32xf32>
    %405 = arith.addf %404, %403 : vector<2x32xf32>
    %406 = arith.divf %404, %405 : vector<2x32xf32>
    %407 = vector.extract_strided_slice %387 {offsets = [0, 64], sizes = [2, 32], strides = [1, 1]} : vector<2x128xf32> to vector<2x32xf32>
    %408 = math.tanh %407 : vector<2x32xf32>
    %409 = vector.extract_strided_slice %387 {offsets = [0, 96], sizes = [2, 32], strides = [1, 1]} : vector<2x128xf32> to vector<2x32xf32>
    %410 = arith.negf %409 : vector<2x32xf32>
    %411 = math.exp %410 : vector<2x32xf32>
    %cst_122 = arith.constant 1.000000e+00 : f32
    %412 = vector.broadcast %cst_122 : f32 to vector<2x32xf32>
    %413 = arith.addf %412, %411 : vector<2x32xf32>
    %414 = arith.divf %412, %413 : vector<2x32xf32>
    %415 = arith.mulf %406, %344 : vector<2x32xf32>
    %416 = arith.mulf %400, %408 : vector<2x32xf32>
    %417 = arith.addf %415, %416 : vector<2x32xf32>
    %418 = math.tanh %417 : vector<2x32xf32>
    %419 = arith.mulf %414, %418 : vector<2x32xf32>
    %420 = vector.extract_strided_slice %394 {offsets = [0, 0], sizes = [2, 32], strides = [1, 1]} : vector<2x128xf32> to vector<2x32xf32>
    %421 = arith.negf %420 : vector<2x32xf32>
    %422 = math.exp %421 : vector<2x32xf32>
    %cst_123 = arith.constant 1.000000e+00 : f32
    %423 = vector.broadcast %cst_123 : f32 to vector<2x32xf32>
    %424 = arith.addf %423, %422 : vector<2x32xf32>
    %425 = arith.divf %423, %424 : vector<2x32xf32>
    %426 = vector.extract_strided_slice %394 {offsets = [0, 32], sizes = [2, 32], strides = [1, 1]} : vector<2x128xf32> to vector<2x32xf32>
    %427 = arith.negf %426 : vector<2x32xf32>
    %428 = math.exp %427 : vector<2x32xf32>
    %cst_124 = arith.constant 1.000000e+00 : f32
    %429 = vector.broadcast %cst_124 : f32 to vector<2x32xf32>
    %430 = arith.addf %429, %428 : vector<2x32xf32>
    %431 = arith.divf %429, %430 : vector<2x32xf32>
    %432 = vector.extract_strided_slice %394 {offsets = [0, 64], sizes = [2, 32], strides = [1, 1]} : vector<2x128xf32> to vector<2x32xf32>
    %433 = math.tanh %432 : vector<2x32xf32>
    %434 = vector.extract_strided_slice %394 {offsets = [0, 96], sizes = [2, 32], strides = [1, 1]} : vector<2x128xf32> to vector<2x32xf32>
    %435 = arith.negf %434 : vector<2x32xf32>
    %436 = math.exp %435 : vector<2x32xf32>
    %cst_125 = arith.constant 1.000000e+00 : f32
    %437 = vector.broadcast %cst_125 : f32 to vector<2x32xf32>
    %438 = arith.addf %437, %436 : vector<2x32xf32>
    %439 = arith.divf %437, %438 : vector<2x32xf32>
    %440 = arith.mulf %431, %369 : vector<2x32xf32>
    %441 = arith.mulf %425, %433 : vector<2x32xf32>
    %442 = arith.addf %440, %441 : vector<2x32xf32>
    %443 = math.tanh %442 : vector<2x32xf32>
    %444 = arith.mulf %439, %443 : vector<2x32xf32>
    %445 = arith.index_cast %c5_i32 : i32 to index
    %c0_126 = arith.constant 0 : index
    %c0_127 = arith.constant 0 : index
    %446 = vector.load %arg4[%445, %c0_126, %c0_127] : memref<8x2x32xf32, #tpu.memory_space<vmem>>, vector<1x2x32xf32>
    %447 = vector.shape_cast %446 : vector<1x2x32xf32> to vector<2x32xf32>
    %448 = vector.shape_cast %419 : vector<2x32xf32> to vector<1x2x32xf32>
    tpu.vector_store %arg4[%445, %c0_126, %c0_127], %448 {strides = array<i32>} : memref<8x2x32xf32, #tpu.memory_space<vmem>>, vector<1x2x32xf32>,
    %449 = arith.index_cast %380 : i32 to index
    %c0_128 = arith.constant 0 : index
    %c0_129 = arith.constant 0 : index
    %450 = vector.load %arg5[%449, %c0_128, %c0_129] : memref<8x2x32xf32, #tpu.memory_space<vmem>>, vector<1x2x32xf32>
    %451 = vector.shape_cast %450 : vector<1x2x32xf32> to vector<2x32xf32>
    %452 = vector.shape_cast %444 : vector<2x32xf32> to vector<1x2x32xf32>
    tpu.vector_store %arg5[%449, %c0_128, %c0_129], %452 {strides = array<i32>} : memref<8x2x32xf32, #tpu.memory_space<vmem>>, vector<1x2x32xf32>,
    %c6_i32 = arith.constant 6 : i32
    %c7_i32_130 = arith.constant 7 : i32
    %453 = arith.subi %c7_i32_130, %c6_i32 : i32
    %c0_131 = arith.constant 0 : index
    %454 = arith.index_cast %c6_i32 : i32 to index
    %c0_132 = arith.constant 0 : index
    %c0_133 = arith.constant 0 : index
    %455 = vector.load %arg1[%c0_131, %454, %c0_132, %c0_133] : memref<1x8x2x128xbf16, #tpu.memory_space<vmem>>, vector<1x1x2x128xbf16>
    %456 = vector.shape_cast %455 : vector<1x1x2x128xbf16> to vector<2x128xbf16>
    %457 = arith.extf %456 : vector<2x128xbf16> to vector<2x128xf32>
    %458 = arith.truncf %419 : vector<2x32xf32> to vector<2x32xbf16>
    %cst_134 = arith.constant dense<0.000000e+00> : vector<2x128xf32>
    %459 = tpu.matmul %458, %4, %cst_134 {dimension_numbers = #tpu.dot_dimension_numbers<[1], [0], [0], [1], [0, 0, 1, 1], [], []>} : vector<2x32xbf16>, vector<32x128xbf16>, vector<2x128xf32> -> vector<2x128xf32>
    %460 = arith.addf %457, %459 : vector<2x128xf32>
    %c0_135 = arith.constant 0 : index
    %461 = arith.index_cast %453 : i32 to index
    %c0_136 = arith.constant 0 : index
    %c0_137 = arith.constant 0 : index
    %462 = vector.load %arg2[%c0_135, %461, %c0_136, %c0_137] : memref<1x8x2x128xbf16, #tpu.memory_space<vmem>>, vector<1x1x2x128xbf16>
    %463 = vector.shape_cast %462 : vector<1x1x2x128xbf16> to vector<2x128xbf16>
    %464 = arith.extf %463 : vector<2x128xbf16> to vector<2x128xf32>
    %465 = arith.truncf %444 : vector<2x32xf32> to vector<2x32xbf16>
    %cst_138 = arith.constant dense<0.000000e+00> : vector<2x128xf32>
    %466 = tpu.matmul %465, %6, %cst_138 {dimension_numbers = #tpu.dot_dimension_numbers<[1], [0], [0], [1], [0, 0, 1, 1], [], []>} : vector<2x32xbf16>, vector<32x128xbf16>, vector<2x128xf32> -> vector<2x128xf32>
    %467 = arith.addf %464, %466 : vector<2x128xf32>
    %468 = vector.extract_strided_slice %460 {offsets = [0, 0], sizes = [2, 32], strides = [1, 1]} : vector<2x128xf32> to vector<2x32xf32>
    %469 = arith.negf %468 : vector<2x32xf32>
    %470 = math.exp %469 : vector<2x32xf32>
    %cst_139 = arith.constant 1.000000e+00 : f32
    %471 = vector.broadcast %cst_139 : f32 to vector<2x32xf32>
    %472 = arith.addf %471, %470 : vector<2x32xf32>
    %473 = arith.divf %471, %472 : vector<2x32xf32>
    %474 = vector.extract_strided_slice %460 {offsets = [0, 32], sizes = [2, 32], strides = [1, 1]} : vector<2x128xf32> to vector<2x32xf32>
    %475 = arith.negf %474 : vector<2x32xf32>
    %476 = math.exp %475 : vector<2x32xf32>
    %cst_140 = arith.constant 1.000000e+00 : f32
    %477 = vector.broadcast %cst_140 : f32 to vector<2x32xf32>
    %478 = arith.addf %477, %476 : vector<2x32xf32>
    %479 = arith.divf %477, %478 : vector<2x32xf32>
    %480 = vector.extract_strided_slice %460 {offsets = [0, 64], sizes = [2, 32], strides = [1, 1]} : vector<2x128xf32> to vector<2x32xf32>
    %481 = math.tanh %480 : vector<2x32xf32>
    %482 = vector.extract_strided_slice %460 {offsets = [0, 96], sizes = [2, 32], strides = [1, 1]} : vector<2x128xf32> to vector<2x32xf32>
    %483 = arith.negf %482 : vector<2x32xf32>
    %484 = math.exp %483 : vector<2x32xf32>
    %cst_141 = arith.constant 1.000000e+00 : f32
    %485 = vector.broadcast %cst_141 : f32 to vector<2x32xf32>
    %486 = arith.addf %485, %484 : vector<2x32xf32>
    %487 = arith.divf %485, %486 : vector<2x32xf32>
    %488 = arith.mulf %479, %417 : vector<2x32xf32>
    %489 = arith.mulf %473, %481 : vector<2x32xf32>
    %490 = arith.addf %488, %489 : vector<2x32xf32>
    %491 = math.tanh %490 : vector<2x32xf32>
    %492 = arith.mulf %487, %491 : vector<2x32xf32>
    %493 = vector.extract_strided_slice %467 {offsets = [0, 0], sizes = [2, 32], strides = [1, 1]} : vector<2x128xf32> to vector<2x32xf32>
    %494 = arith.negf %493 : vector<2x32xf32>
    %495 = math.exp %494 : vector<2x32xf32>
    %cst_142 = arith.constant 1.000000e+00 : f32
    %496 = vector.broadcast %cst_142 : f32 to vector<2x32xf32>
    %497 = arith.addf %496, %495 : vector<2x32xf32>
    %498 = arith.divf %496, %497 : vector<2x32xf32>
    %499 = vector.extract_strided_slice %467 {offsets = [0, 32], sizes = [2, 32], strides = [1, 1]} : vector<2x128xf32> to vector<2x32xf32>
    %500 = arith.negf %499 : vector<2x32xf32>
    %501 = math.exp %500 : vector<2x32xf32>
    %cst_143 = arith.constant 1.000000e+00 : f32
    %502 = vector.broadcast %cst_143 : f32 to vector<2x32xf32>
    %503 = arith.addf %502, %501 : vector<2x32xf32>
    %504 = arith.divf %502, %503 : vector<2x32xf32>
    %505 = vector.extract_strided_slice %467 {offsets = [0, 64], sizes = [2, 32], strides = [1, 1]} : vector<2x128xf32> to vector<2x32xf32>
    %506 = math.tanh %505 : vector<2x32xf32>
    %507 = vector.extract_strided_slice %467 {offsets = [0, 96], sizes = [2, 32], strides = [1, 1]} : vector<2x128xf32> to vector<2x32xf32>
    %508 = arith.negf %507 : vector<2x32xf32>
    %509 = math.exp %508 : vector<2x32xf32>
    %cst_144 = arith.constant 1.000000e+00 : f32
    %510 = vector.broadcast %cst_144 : f32 to vector<2x32xf32>
    %511 = arith.addf %510, %509 : vector<2x32xf32>
    %512 = arith.divf %510, %511 : vector<2x32xf32>
    %513 = arith.mulf %504, %442 : vector<2x32xf32>
    %514 = arith.mulf %498, %506 : vector<2x32xf32>
    %515 = arith.addf %513, %514 : vector<2x32xf32>
    %516 = math.tanh %515 : vector<2x32xf32>
    %517 = arith.mulf %512, %516 : vector<2x32xf32>
    %518 = arith.index_cast %c6_i32 : i32 to index
    %c0_145 = arith.constant 0 : index
    %c0_146 = arith.constant 0 : index
    %519 = vector.load %arg4[%518, %c0_145, %c0_146] : memref<8x2x32xf32, #tpu.memory_space<vmem>>, vector<1x2x32xf32>
    %520 = vector.shape_cast %519 : vector<1x2x32xf32> to vector<2x32xf32>
    %521 = vector.shape_cast %492 : vector<2x32xf32> to vector<1x2x32xf32>
    tpu.vector_store %arg4[%518, %c0_145, %c0_146], %521 {strides = array<i32>} : memref<8x2x32xf32, #tpu.memory_space<vmem>>, vector<1x2x32xf32>,
    %522 = arith.index_cast %453 : i32 to index
    %c0_147 = arith.constant 0 : index
    %c0_148 = arith.constant 0 : index
    %523 = vector.load %arg5[%522, %c0_147, %c0_148] : memref<8x2x32xf32, #tpu.memory_space<vmem>>, vector<1x2x32xf32>
    %524 = vector.shape_cast %523 : vector<1x2x32xf32> to vector<2x32xf32>
    %525 = vector.shape_cast %517 : vector<2x32xf32> to vector<1x2x32xf32>
    tpu.vector_store %arg5[%522, %c0_147, %c0_148], %525 {strides = array<i32>} : memref<8x2x32xf32, #tpu.memory_space<vmem>>, vector<1x2x32xf32>,
    %c7_i32_149 = arith.constant 7 : i32
    %c7_i32_150 = arith.constant 7 : i32
    %526 = arith.subi %c7_i32_150, %c7_i32_149 : i32
    %c0_151 = arith.constant 0 : index
    %527 = arith.index_cast %c7_i32_149 : i32 to index
    %c0_152 = arith.constant 0 : index
    %c0_153 = arith.constant 0 : index
    %528 = vector.load %arg1[%c0_151, %527, %c0_152, %c0_153] : memref<1x8x2x128xbf16, #tpu.memory_space<vmem>>, vector<1x1x2x128xbf16>
    %529 = vector.shape_cast %528 : vector<1x1x2x128xbf16> to vector<2x128xbf16>
    %530 = arith.extf %529 : vector<2x128xbf16> to vector<2x128xf32>
    %531 = arith.truncf %492 : vector<2x32xf32> to vector<2x32xbf16>
    %cst_154 = arith.constant dense<0.000000e+00> : vector<2x128xf32>
    %532 = tpu.matmul %531, %4, %cst_154 {dimension_numbers = #tpu.dot_dimension_numbers<[1], [0], [0], [1], [0, 0, 1, 1], [], []>} : vector<2x32xbf16>, vector<32x128xbf16>, vector<2x128xf32> -> vector<2x128xf32>
    %533 = arith.addf %530, %532 : vector<2x128xf32>
    %c0_155 = arith.constant 0 : index
    %534 = arith.index_cast %526 : i32 to index
    %c0_156 = arith.constant 0 : index
    %c0_157 = arith.constant 0 : index
    %535 = vector.load %arg2[%c0_155, %534, %c0_156, %c0_157] : memref<1x8x2x128xbf16, #tpu.memory_space<vmem>>, vector<1x1x2x128xbf16>
    %536 = vector.shape_cast %535 : vector<1x1x2x128xbf16> to vector<2x128xbf16>
    %537 = arith.extf %536 : vector<2x128xbf16> to vector<2x128xf32>
    %538 = arith.truncf %517 : vector<2x32xf32> to vector<2x32xbf16>
    %cst_158 = arith.constant dense<0.000000e+00> : vector<2x128xf32>
    %539 = tpu.matmul %538, %6, %cst_158 {dimension_numbers = #tpu.dot_dimension_numbers<[1], [0], [0], [1], [0, 0, 1, 1], [], []>} : vector<2x32xbf16>, vector<32x128xbf16>, vector<2x128xf32> -> vector<2x128xf32>
    %540 = arith.addf %537, %539 : vector<2x128xf32>
    %541 = vector.extract_strided_slice %533 {offsets = [0, 0], sizes = [2, 32], strides = [1, 1]} : vector<2x128xf32> to vector<2x32xf32>
    %542 = arith.negf %541 : vector<2x32xf32>
    %543 = math.exp %542 : vector<2x32xf32>
    %cst_159 = arith.constant 1.000000e+00 : f32
    %544 = vector.broadcast %cst_159 : f32 to vector<2x32xf32>
    %545 = arith.addf %544, %543 : vector<2x32xf32>
    %546 = arith.divf %544, %545 : vector<2x32xf32>
    %547 = vector.extract_strided_slice %533 {offsets = [0, 32], sizes = [2, 32], strides = [1, 1]} : vector<2x128xf32> to vector<2x32xf32>
    %548 = arith.negf %547 : vector<2x32xf32>
    %549 = math.exp %548 : vector<2x32xf32>
    %cst_160 = arith.constant 1.000000e+00 : f32
    %550 = vector.broadcast %cst_160 : f32 to vector<2x32xf32>
    %551 = arith.addf %550, %549 : vector<2x32xf32>
    %552 = arith.divf %550, %551 : vector<2x32xf32>
    %553 = vector.extract_strided_slice %533 {offsets = [0, 64], sizes = [2, 32], strides = [1, 1]} : vector<2x128xf32> to vector<2x32xf32>
    %554 = math.tanh %553 : vector<2x32xf32>
    %555 = vector.extract_strided_slice %533 {offsets = [0, 96], sizes = [2, 32], strides = [1, 1]} : vector<2x128xf32> to vector<2x32xf32>
    %556 = arith.negf %555 : vector<2x32xf32>
    %557 = math.exp %556 : vector<2x32xf32>
    %cst_161 = arith.constant 1.000000e+00 : f32
    %558 = vector.broadcast %cst_161 : f32 to vector<2x32xf32>
    %559 = arith.addf %558, %557 : vector<2x32xf32>
    %560 = arith.divf %558, %559 : vector<2x32xf32>
    %561 = arith.mulf %552, %490 : vector<2x32xf32>
    %562 = arith.mulf %546, %554 : vector<2x32xf32>
    %563 = arith.addf %561, %562 : vector<2x32xf32>
    %564 = math.tanh %563 : vector<2x32xf32>
    %565 = arith.mulf %560, %564 : vector<2x32xf32>
    %566 = vector.extract_strided_slice %540 {offsets = [0, 0], sizes = [2, 32], strides = [1, 1]} : vector<2x128xf32> to vector<2x32xf32>
    %567 = arith.negf %566 : vector<2x32xf32>
    %568 = math.exp %567 : vector<2x32xf32>
    %cst_162 = arith.constant 1.000000e+00 : f32
    %569 = vector.broadcast %cst_162 : f32 to vector<2x32xf32>
    %570 = arith.addf %569, %568 : vector<2x32xf32>
    %571 = arith.divf %569, %570 : vector<2x32xf32>
    %572 = vector.extract_strided_slice %540 {offsets = [0, 32], sizes = [2, 32], strides = [1, 1]} : vector<2x128xf32> to vector<2x32xf32>
    %573 = arith.negf %572 : vector<2x32xf32>
    %574 = math.exp %573 : vector<2x32xf32>
    %cst_163 = arith.constant 1.000000e+00 : f32
    %575 = vector.broadcast %cst_163 : f32 to vector<2x32xf32>
    %576 = arith.addf %575, %574 : vector<2x32xf32>
    %577 = arith.divf %575, %576 : vector<2x32xf32>
    %578 = vector.extract_strided_slice %540 {offsets = [0, 64], sizes = [2, 32], strides = [1, 1]} : vector<2x128xf32> to vector<2x32xf32>
    %579 = math.tanh %578 : vector<2x32xf32>
    %580 = vector.extract_strided_slice %540 {offsets = [0, 96], sizes = [2, 32], strides = [1, 1]} : vector<2x128xf32> to vector<2x32xf32>
    %581 = arith.negf %580 : vector<2x32xf32>
    %582 = math.exp %581 : vector<2x32xf32>
    %cst_164 = arith.constant 1.000000e+00 : f32
    %583 = vector.broadcast %cst_164 : f32 to vector<2x32xf32>
    %584 = arith.addf %583, %582 : vector<2x32xf32>
    %585 = arith.divf %583, %584 : vector<2x32xf32>
    %586 = arith.mulf %577, %515 : vector<2x32xf32>
    %587 = arith.mulf %571, %579 : vector<2x32xf32>
    %588 = arith.addf %586, %587 : vector<2x32xf32>
    %589 = math.tanh %588 : vector<2x32xf32>
    %590 = arith.mulf %585, %589 : vector<2x32xf32>
    %591 = arith.index_cast %c7_i32_149 : i32 to index
    %c0_165 = arith.constant 0 : index
    %c0_166 = arith.constant 0 : index
    %592 = vector.load %arg4[%591, %c0_165, %c0_166] : memref<8x2x32xf32, #tpu.memory_space<vmem>>, vector<1x2x32xf32>
    %593 = vector.shape_cast %592 : vector<1x2x32xf32> to vector<2x32xf32>
    %594 = vector.shape_cast %565 : vector<2x32xf32> to vector<1x2x32xf32>
    tpu.vector_store %arg4[%591, %c0_165, %c0_166], %594 {strides = array<i32>} : memref<8x2x32xf32, #tpu.memory_space<vmem>>, vector<1x2x32xf32>,
    %595 = arith.index_cast %526 : i32 to index
    %c0_167 = arith.constant 0 : index
    %c0_168 = arith.constant 0 : index
    %596 = vector.load %arg5[%595, %c0_167, %c0_168] : memref<8x2x32xf32, #tpu.memory_space<vmem>>, vector<1x2x32xf32>
    %597 = vector.shape_cast %596 : vector<1x2x32xf32> to vector<2x32xf32>
    %598 = vector.shape_cast %590 : vector<2x32xf32> to vector<1x2x32xf32>
    tpu.vector_store %arg5[%595, %c0_167, %c0_168], %598 {strides = array<i32>} : memref<8x2x32xf32, #tpu.memory_space<vmem>>, vector<1x2x32xf32>,
    %c8_i32 = arith.constant 8 : i32
    %c0_169 = arith.constant 0 : index
    %c0_170 = arith.constant 0 : index
    %c0_171 = arith.constant 0 : index
    %599 = vector.load %arg6[%c0_169, %c0_170, %c0_171] : memref<2x2x32xf32, #tpu.memory_space<vmem>>, vector<1x2x32xf32>
    %600 = vector.shape_cast %599 : vector<1x2x32xf32> to vector<2x32xf32>
    %601 = vector.shape_cast %565 : vector<2x32xf32> to vector<1x2x32xf32>
    tpu.vector_store %arg6[%c0_169, %c0_170, %c0_171], %601 {strides = array<i32>} : memref<2x2x32xf32, #tpu.memory_space<vmem>>, vector<1x2x32xf32>,
    %c0_172 = arith.constant 0 : index
    %c0_173 = arith.constant 0 : index
    %c0_174 = arith.constant 0 : index
    %602 = vector.load %arg7[%c0_172, %c0_173, %c0_174] : memref<2x2x32xf32, #tpu.memory_space<vmem>>, vector<1x2x32xf32>
    %603 = vector.shape_cast %602 : vector<1x2x32xf32> to vector<2x32xf32>
    %604 = vector.shape_cast %563 : vector<2x32xf32> to vector<1x2x32xf32>
    tpu.vector_store %arg7[%c0_172, %c0_173, %c0_174], %604 {strides = array<i32>} : memref<2x2x32xf32, #tpu.memory_space<vmem>>, vector<1x2x32xf32>,
    %c1_175 = arith.constant 1 : index
    %c0_176 = arith.constant 0 : index
    %c0_177 = arith.constant 0 : index
    %605 = vector.load %arg6[%c1_175, %c0_176, %c0_177] : memref<2x2x32xf32, #tpu.memory_space<vmem>>, vector<1x2x32xf32>
    %606 = vector.shape_cast %605 : vector<1x2x32xf32> to vector<2x32xf32>
    %607 = vector.shape_cast %590 : vector<2x32xf32> to vector<1x2x32xf32>
    tpu.vector_store %arg6[%c1_175, %c0_176, %c0_177], %607 {strides = array<i32>} : memref<2x2x32xf32, #tpu.memory_space<vmem>>, vector<1x2x32xf32>,
    %c1_178 = arith.constant 1 : index
    %c0_179 = arith.constant 0 : index
    %c0_180 = arith.constant 0 : index
    %608 = vector.load %arg7[%c1_178, %c0_179, %c0_180] : memref<2x2x32xf32, #tpu.memory_space<vmem>>, vector<1x2x32xf32>
    %609 = vector.shape_cast %608 : vector<1x2x32xf32> to vector<2x32xf32>
    %610 = vector.shape_cast %588 : vector<2x32xf32> to vector<1x2x32xf32>
    tpu.vector_store %arg7[%c1_178, %c0_179, %c0_180], %610 {strides = array<i32>} : memref<2x2x32xf32, #tpu.memory_space<vmem>>, vector<1x2x32xf32>,
    return
  }
  func.func @transform_0(%arg0: i32) -> (i32, i32, i32, i32) {
    %c0_i32 = arith.constant 0 : i32
    %c0_i32_0 = arith.constant 0 : i32
    %c0_i32_1 = arith.constant 0 : i32
    %c0_i32_2 = arith.constant 0 : i32
    return %c0_i32, %arg0, %c0_i32_0, %c0_i32_1 : i32, i32, i32, i32
  }
  func.func @transform_1(%arg0: i32) -> (i32, i32, i32, i32) {
    %c0_i32 = arith.constant 0 : i32
    %0 = arith.subi %c0_i32, %arg0 : i32
    %c1_i32 = arith.constant 1 : i32
    %c0_i32_0 = arith.constant 0 : i32
    %c0_i32_1 = arith.constant 0 : i32
    %c0_i32_2 = arith.constant 0 : i32
    return %c1_i32, %0, %c0_i32_0, %c0_i32_1 : i32, i32, i32, i32
  }
  func.func @transform_2(%arg0: i32) -> (i32, i32, i32) {
    %c0_i32 = arith.constant 0 : i32
    %c0_i32_0 = arith.constant 0 : i32
    %c0_i32_1 = arith.constant 0 : i32
    %c0_i32_2 = arith.constant 0 : i32
    return %c0_i32, %c0_i32_0, %c0_i32_1 : i32, i32, i32
  }
  func.func @transform_3(%arg0: i32) -> (i32, i32, i32) {
    %c0_i32 = arith.constant 0 : i32
    %c0_i32_0 = arith.constant 0 : i32
    %c0_i32_1 = arith.constant 0 : i32
    return %arg0, %c0_i32, %c0_i32_0 : i32, i32, i32
  }
  func.func @transform_4(%arg0: i32) -> (i32, i32, i32) {
    %c0_i32 = arith.constant 0 : i32
    %0 = arith.subi %c0_i32, %arg0 : i32
    %c0_i32_0 = arith.constant 0 : i32
    %c0_i32_1 = arith.constant 0 : i32
    %c0_i32_2 = arith.constant 0 : i32
    return %0, %c0_i32_0, %c0_i32_1 : i32, i32, i32
  }
}

module attributes {stable_mosaic.version = 11 : i64} {
  func.func @_proj2_kernel(%arg0: i32, %arg1: i32, %arg2: i32, %arg3: memref<16x32xf32, #tpu.memory_space<vmem>>, %arg4: memref<16x32xf32, #tpu.memory_space<vmem>>, %arg5: memref<1x32x128xbf16, #tpu.memory_space<vmem>>, %arg6: memref<1x32x128xbf16, #tpu.memory_space<vmem>>, %arg7: memref<1x1x128xf32, #tpu.memory_space<vmem>>, %arg8: memref<1x16x128xf32, #tpu.memory_space<vmem>>) attributes {dimension_semantics = [#tpu.dimension_semantics<parallel>, #tpu.dimension_semantics<parallel>, #tpu.dimension_semantics<parallel>], iteration_bounds = array<i64: 1, 1, 1>, scalar_prefetch = 0 : i64, scratch_operands = 0 : i64, tpu.core_type = #tpu.core_type<tc>, window_params = [{transform_indices = @transform_0, window_bounds = array<i64: 16, 32>}, {transform_indices = @transform_1, window_bounds = array<i64: 16, 32>}, {transform_indices = @transform_2, window_bounds = array<i64: 1, 32, 128>}, {transform_indices = @transform_3, window_bounds = array<i64: 1, 32, 128>}, {transform_indices = @transform_4, window_bounds = array<i64: 1, 1, 128>}, {transform_indices = @transform_5, window_bounds = array<i64: 1, 16, 128>}]} {
    %c0 = arith.constant 0 : index
    %c0_0 = arith.constant 0 : index
    %0 = vector.load %arg3[%c0, %c0_0] : memref<16x32xf32, #tpu.memory_space<vmem>>, vector<16x32xf32>
    %1 = arith.truncf %0 : vector<16x32xf32> to vector<16x32xbf16>
    %c0_1 = arith.constant 0 : index
    %c0_2 = arith.constant 0 : index
    %c0_3 = arith.constant 0 : index
    %2 = vector.load %arg5[%c0_1, %c0_2, %c0_3] : memref<1x32x128xbf16, #tpu.memory_space<vmem>>, vector<1x32x128xbf16>
    %3 = vector.shape_cast %2 : vector<1x32x128xbf16> to vector<32x128xbf16>
    %cst = arith.constant dense<0.000000e+00> : vector<16x128xf32>
    %4 = tpu.matmul %1, %3, %cst {dimension_numbers = #tpu.dot_dimension_numbers<[1], [0], [0], [1], [0, 0, 1, 1], [], []>} : vector<16x32xbf16>, vector<32x128xbf16>, vector<16x128xf32> -> vector<16x128xf32>
    %c0_4 = arith.constant 0 : index
    %c0_5 = arith.constant 0 : index
    %5 = vector.load %arg4[%c0_4, %c0_5] : memref<16x32xf32, #tpu.memory_space<vmem>>, vector<16x32xf32>
    %6 = arith.truncf %5 : vector<16x32xf32> to vector<16x32xbf16>
    %c0_6 = arith.constant 0 : index
    %c0_7 = arith.constant 0 : index
    %c0_8 = arith.constant 0 : index
    %7 = vector.load %arg6[%c0_6, %c0_7, %c0_8] : memref<1x32x128xbf16, #tpu.memory_space<vmem>>, vector<1x32x128xbf16>
    %8 = vector.shape_cast %7 : vector<1x32x128xbf16> to vector<32x128xbf16>
    %cst_9 = arith.constant dense<0.000000e+00> : vector<16x128xf32>
    %9 = tpu.matmul %6, %8, %cst_9 {dimension_numbers = #tpu.dot_dimension_numbers<[1], [0], [0], [1], [0, 0, 1, 1], [], []>} : vector<16x32xbf16>, vector<32x128xbf16>, vector<16x128xf32> -> vector<16x128xf32>
    %10 = arith.addf %4, %9 : vector<16x128xf32>
    %c0_10 = arith.constant 0 : index
    %c0_11 = arith.constant 0 : index
    %c0_12 = arith.constant 0 : index
    %11 = vector.load %arg7[%c0_10, %c0_11, %c0_12] : memref<1x1x128xf32, #tpu.memory_space<vmem>>, vector<1x1x128xf32>
    %12 = vector.shape_cast %11 : vector<1x1x128xf32> to vector<1x128xf32>
    %13 = vector.broadcast %12 : vector<1x128xf32> to vector<16x128xf32>
    %14 = arith.addf %10, %13 : vector<16x128xf32>
    %c0_13 = arith.constant 0 : index
    %c0_14 = arith.constant 0 : index
    %c0_15 = arith.constant 0 : index
    %15 = vector.load %arg8[%c0_13, %c0_14, %c0_15] : memref<1x16x128xf32, #tpu.memory_space<vmem>>, vector<1x16x128xf32>
    %16 = vector.shape_cast %15 : vector<1x16x128xf32> to vector<16x128xf32>
    %17 = vector.shape_cast %14 : vector<16x128xf32> to vector<1x16x128xf32>
    tpu.vector_store %arg8[%c0_13, %c0_14, %c0_15], %17 {strides = array<i32>} : memref<1x16x128xf32, #tpu.memory_space<vmem>>, vector<1x16x128xf32>,
    return
  }
  func.func @transform_0(%arg0: i32, %arg1: i32, %arg2: i32) -> (i32, i32) {
    %c0_i32 = arith.constant 0 : i32
    %c0_i32_0 = arith.constant 0 : i32
    return %arg1, %c0_i32 : i32, i32
  }
  func.func @transform_1(%arg0: i32, %arg1: i32, %arg2: i32) -> (i32, i32) {
    %c0_i32 = arith.constant 0 : i32
    %c0_i32_0 = arith.constant 0 : i32
    return %arg1, %c0_i32 : i32, i32
  }
  func.func @transform_2(%arg0: i32, %arg1: i32, %arg2: i32) -> (i32, i32, i32) {
    %c0_i32 = arith.constant 0 : i32
    %c0_i32_0 = arith.constant 0 : i32
    return %arg0, %c0_i32, %arg2 : i32, i32, i32
  }
  func.func @transform_3(%arg0: i32, %arg1: i32, %arg2: i32) -> (i32, i32, i32) {
    %c0_i32 = arith.constant 0 : i32
    %c0_i32_0 = arith.constant 0 : i32
    return %arg0, %c0_i32, %arg2 : i32, i32, i32
  }
  func.func @transform_4(%arg0: i32, %arg1: i32, %arg2: i32) -> (i32, i32, i32) {
    %c0_i32 = arith.constant 0 : i32
    %c0_i32_0 = arith.constant 0 : i32
    return %arg0, %c0_i32, %arg2 : i32, i32, i32
  }
  func.func @transform_5(%arg0: i32, %arg1: i32, %arg2: i32) -> (i32, i32, i32) {
    %c0_i32 = arith.constant 0 : i32
    return %arg0, %arg1, %arg2 : i32, i32, i32
  }
}

</mosaic_0001>

<bundles_post_ra>
// kernel: decoder_forward.5
= control target key start
LH: loop header
LB: loop body
LE: loop exit
PB: predicated region body
PF: predicated region fallthrough
CT: control target
= control target key end

     0   :  { %s588_s12 = smov 0   ;;  %s590_s13 = smov 0   ;;  %s630_s0 = inlined_call_operand.vmem [shape: f32[16,32], index: 0, kind: input, shape index: {}]   ;;  %s631_s1 = inlined_call_operand.vmem [shape: bf16[2,32,128], index: 1, kind: input, shape index: {}]   ;;  %s632_s2 = inlined_call_operand.vmem [shape: f32[2,1,128], index: 2, kind: input, shape index: {}]   ;;  %s633_s3 = inlined_call_operand.vmem [shape: bf16[2,16,128], index: 3, kind: output, shape index: {}]  }
   0x1   :  { %s592_s14 = smov 0  }
   0x2 LB: > { %s32_s15 = sadd.s32 1, %s560_s13  ;;  %p481_p0 = scmp.ge.s32.totalorder %s564_s14, 1  ;;  %s564_s14 = sphi %s592_s14, %s13_s14   ;;  %s560_s13 = sphi %s590_s13, %s635_s13   ;;  %s556_s12 = sphi %s588_s12, %s634_s12  }
   0x3   : > { %p34_p1 = scmp.ge.s32.totalorder %s32_s15, 2  ;;  %p189_p2 = scmp.lt.s32.totalorder %s564_s14, 3 }
   0x5   : > { %s637_s15 = smov (%p34_p1, %s32_s15), 0  ;;  %p190_p3 = pnand %p481_p0, %p189_p2 }
   0x6   : > { %p240_p4 = scmp.lt.s32.totalorder (!%p190_p3), %s556_s12, 1  ;;  %v566_v0 = vmov (!%p190_p3), 0.0   ;;  %vm567_vm0 = vmmov (!%p190_p3), 0   ;;  %v268_v3 = vld [vmem:[%s630_s0] sm:$0xff] (!%p190_p3)  ;;  %v269_v4 = vld [vmem:[%s630_s0 + $0x8] sm:$0xff] (!%p190_p3)  ;;  %vm294_vm1 = vcmask (!%p190_p3), 261120  }
   0x7   : > { %193 = sbr.rel (%p190_p3) target bundleno = 244 (0xf4), region = 32  ;;  %506 = vmatprep.subr.bf16.mxu0 (!%p190_p3), %v566_v0  ;;  %510 = vmatprep.mubr.msk.bf16.mxu0 (!%p190_p3), %vm567_vm0, %v566_v0  ;;  %v270_v5 = vpack.c.bf16 (!%p190_p3), %v269_v4, %v268_v3 }
   0xe   : > { %s639_s12 = smov (!%p240_p4, %s556_s12), 1 }
   0xf   : > { %s494_s16 = sshll.u32 %s639_s12, 4  ;;  %s253_s26 = scalar_lea.vmem %s632_s2, %s639_s12 }
  0x10   : > { %s247_s19 = scalar_lea.vmem %s631_s1, %s494_s16  ;;  %v486_v6 = vld [vmem:[%s253_s26] ss:$0 sm:$0xff]  ;;  %s495_s27 = sshll.u32 %s639_s12, 3 }
  0x11   : > { %v540_v1 = vld [vmem:[%s247_s19] sm:$0xff]   ;;  %v541_v2 = vld [vmem:[%s247_s19 + $0x8] sm:$0xff]   ;;  %s265_s30 = scalar_lea.vmem %s633_s3, %s495_s27 }
  0x12   : > { %507 = vmatpush3.bf16.msra.mxu0 %v540_v1 }
  0x13   : > { %508 = vmatprep.subr.bf16.mxu0 %v566_v0 }
  0x16   : > { %509 = vmatpush3.bf16.msra.mxu0 %v541_v2 }
  0x19   : > { %511 = vmatmul.mubr.msk.bf16.vlgmr.msra.gmra.mrb[0].mxu0 %vm294_vm1, %v270_v5 }
  0xec   : > { %v332_v7 = vpop.f32.mrb[0].mxu0 }
  0xed   : > { %v512_v8 = vpop.f32.mrb[1].mxu0  ;;  %v333_v10 = vadd.f32 %v486_v6, %v332_v7 }
  0xee   : > { %v335_v9 = vpop.f32.mrb[2].mxu0 }
  0xef   : > { %v336_v11 = vadd.f32 %v486_v6, %v335_v9  ;;  %v513_v12 = vpop.f32.mrb[3].mxu0 }
  0xf1   : > { %v501_v13 = vpack.c.bf16 %v336_v11, %v333_v10 }
  0xf3   : > { %502 = vst [vmem:[%s265_s30] sm:$0xff] %v501_v13  }
  0xf4 PF: > { %s13_s14 = sadd.s32 1, %s564_s14   ;;  %s634_s12 = smov %s560_s13 }
  0xf5   : > { %p10_p5 = scmp.ge.s32.totalorder %s13_s14, 4   ;;  %s635_s13 = smov %s637_s15 }
  0xf7   :  { %12 = sbr.rel (!%p10_p5) target bundleno = 2 (0x2), region = 68 }

// kernel: decoder_forward.7
= control target key start
LH: loop header
LB: loop body
LE: loop exit
PB: predicated region body
PF: predicated region fallthrough
CT: control target
= control target key end

     0   :  { %s823_s18 = smov 0   ;;  %s825_s19 = smov 0   ;;  %s879_s0 = inlined_call_operand.vmem [shape: f32[16,32], index: 0, kind: input, shape index: {}]   ;;  %s880_s1 = inlined_call_operand.vmem [shape: f32[16,32], index: 1, kind: input, shape index: {}]   ;;  %s881_s2 = inlined_call_operand.vmem [shape: bf16[2,32,128], index: 2, kind: input, shape index: {}]   ;;  %s882_s3 = inlined_call_operand.vmem [shape: bf16[2,32,128], index: 3, kind: input, shape index: {}]   ;;  %s883_s4 = inlined_call_operand.vmem [shape: f32[2,1,128], index: 4, kind: input, shape index: {}]   ;;  %s884_s5 = inlined_call_operand.vmem [shape: bf16[2,16,128], index: 5, kind: output, shape index: {}]  }
   0x1   :  { %s827_s20 = smov 0  }
   0x2 LB: > { %s34_s21 = sadd.s32 1, %s785_s19  ;;  %p687_p0 = scmp.ge.s32.totalorder %s789_s20, 1  ;;  %s789_s20 = sphi %s827_s20, %s15_s20   ;;  %s785_s19 = sphi %s825_s19, %s886_s19   ;;  %s781_s18 = sphi %s823_s18, %s885_s18  }
   0x3   : > { %p36_p1 = scmp.ge.s32.totalorder %s34_s21, 2  ;;  %p265_p2 = scmp.lt.s32.totalorder %s789_s20, 3 }
   0x5   : > { %s888_s21 = smov (%p36_p1, %s34_s21), 0  ;;  %p266_p3 = pnand %p687_p0, %p265_p2 }
   0x6   : > { %p339_p4 = scmp.lt.s32.totalorder (!%p266_p3), %s781_s18, 1  ;;  %v791_v0 = vmov (!%p266_p3), 0.0   ;;  %vm792_vm0 = vmmov (!%p266_p3), 0   ;;  %v382_v2 = vld [vmem:[%s880_s1] sm:$0xff] (!%p266_p3)  ;;  %v383_v3 = vld [vmem:[%s880_s1 + $0x8] sm:$0xff] (!%p266_p3)  ;;  %vm401_vm1 = vcmask (!%p266_p3), 261120  }
   0x7   : > { %269 = sbr.rel (%p266_p3) target bundleno = 247 (0xf7), region = 40  ;;  %721 = vmatprep.subr.bf16.mxu0 (!%p266_p3), %v791_v0  ;;  %729 = vmatprep.subr.bf16.mxu1 (!%p266_p3), %v791_v0  ;;  %v375_v5 = vld [vmem:[%s879_s0] sm:$0xff] (!%p266_p3)  ;;  %v376_v6 = vld [vmem:[%s879_s0 + $0x8] sm:$0xff] (!%p266_p3)  ;;  %v384_v9 = vpack.c.bf16 (!%p266_p3), %v383_v3, %v382_v2 }
   0x8   : > { %725 = vmatprep.mubr.msk.bf16.mxu0 (!%p266_p3), %vm792_vm0, %v791_v0  ;;  %733 = vmatprep.mubr.msk.bf16.mxu1 (!%p266_p3), %vm792_vm0, %v791_v0  ;;  %v377_v10 = vpack.c.bf16 (!%p266_p3), %v376_v6, %v375_v5 }
   0xe   : > { %s890_s18 = smov (!%p339_p4, %s781_s18), 1 }
   0xf   : > { %s705_s22 = sshll.u32 %s890_s18, 4  ;;  %s360_s14 = scalar_lea.vmem %s883_s4, %s890_s18 }
  0x10   : > { %s354_s25 = scalar_lea.vmem %s882_s3, %s705_s22  ;;  %s346_s28 = scalar_lea.vmem %s881_s2, %s705_s22  ;;  %v700_v17 = vld [vmem:[%s360_s14] ss:$0 sm:$0xff] }
  0x11   : > { %v763_v1 = vld [vmem:[%s354_s25] sm:$0xff]   ;;  %v765_v7 = vld [vmem:[%s354_s25 + $0x8] sm:$0xff]   ;;  %s707_s15 = sshll.u32 %s890_s18, 3 }
  0x12   : > { %v764_v4 = vld [vmem:[%s346_s28] sm:$0xff]   ;;  %722 = vmatpush3.bf16.msra.mxu0 %v763_v1  ;;  %v766_v8 = vld [vmem:[%s346_s28 + $0x8] sm:$0xff]   ;;  %s372_s22 = scalar_lea.vmem %s884_s5, %s707_s15 }
  0x13   : > { %730 = vmatpush3.bf16.msra.mxu1 %v764_v4  ;;  %723 = vmatprep.subr.bf16.mxu0 %v791_v0 }
  0x14   : > { %731 = vmatprep.subr.bf16.mxu1 %v791_v0 }
  0x16   : > { %724 = vmatpush3.bf16.msra.mxu0 %v765_v7 }
  0x17   : > { %732 = vmatpush3.bf16.msra.mxu1 %v766_v8 }
  0x19   : > { %726 = vmatmul.mubr.msk.bf16.vlgmr.msra.gmra.mrb[0].mxu0 %vm401_vm1, %v384_v9 }
  0x1a   : > { %734 = vmatmul.mubr.msk.bf16.vlgmr.msra.gmra.mrb[0].mxu1 %vm401_vm1, %v377_v10 }
  0xec   : > { %v439_v11 = vpop.f32.mrb[0].mxu0 }
  0xed   : > { %v495_v12 = vpop.f32.mrb[0].mxu1  ;;  %v727_v13 = vpop.f32.mrb[1].mxu0 }
  0xee   : > { %v496_v14 = vadd.f32 %v495_v12, %v439_v11  ;;  %v735_v15 = vpop.f32.mrb[1].mxu1  ;;  %v442_v16 = vpop.f32.mrb[2].mxu0 }
  0xef   : > { %v498_v18 = vpop.f32.mrb[2].mxu1  ;;  %v728_v19 = vpop.f32.mrb[3].mxu0 }
  0xf0   : > { %v499_v20 = vadd.f32 %v498_v18, %v442_v16  ;;  %v736_v21 = vpop.f32.mrb[3].mxu1  ;;  %v509_v22 = vadd.f32 %v700_v17, %v496_v14 }
  0xf2   : > { %v510_v23 = vadd.f32 %v700_v17, %v499_v20 }
  0xf4   : > { %v713_v24 = vpack.c.bf16 %v510_v23, %v509_v22 }
  0xf6   : > { %714 = vst [vmem:[%s372_s22] sm:$0xff] %v713_v24  }
  0xf7 PF: > { %s15_s20 = sadd.s32 1, %s789_s20   ;;  %s885_s18 = smov %s785_s19 }
  0xf8   : > { %p12_p5 = scmp.ge.s32.totalorder %s15_s20, 4   ;;  %s886_s19 = smov %s888_s21 }
  0xfa   :  { %14 = sbr.rel (!%p12_p5) target bundleno = 2 (0x2), region = 82 }

// kernel: decoder_forward.9
= control target key start
LH: loop header
LB: loop body
LE: loop exit
PB: predicated region body
PF: predicated region fallthrough
CT: control target
= control target key end

     0   :  { %v198_v0 = vmov 0.0   ;;  %vm199_vm0 = vmmov 0   ;;  %vm47_vm1 = vcmask 261120   ;;  %s263_s3 = inlined_call_operand.vmem [shape: bf16[1,32,128], index: 3, kind: input, shape index: {}]   ;;  %s264_s2 = inlined_call_operand.vmem [shape: bf16[1,32,128], index: 2, kind: input, shape index: {}]   ;;  %s265_s1 = inlined_call_operand.vmem [shape: f32[16,32], index: 1, kind: input, shape index: {}]   ;;  %s266_s0 = inlined_call_operand.vmem [shape: f32[16,32], index: 0, kind: input, shape index: {}]   ;;  %s267_s4 = inlined_call_operand.vmem [shape: f32[1,1,128], index: 4, kind: input, shape index: {}]   ;;  %s268_s5 = inlined_call_operand.vmem [shape: f32[1,16,128], index: 5, kind: output, shape index: {}]  }
   0x1   :  { %176 = vmatprep.subr.bf16.mxu0 %v198_v0  ;;  %184 = vmatprep.subr.bf16.mxu1 %v198_v0  ;;  %v194_v1 = vld [vmem:[%s263_s3] sm:$0xff]   ;;  %v196_v3 = vld [vmem:[%s263_s3 + $0x8] sm:$0xff]  }
   0x2   :  { %v195_v2 = vld [vmem:[%s264_s2] sm:$0xff]   ;;  %180 = vmatprep.mubr.msk.bf16.mxu0 %vm199_vm0, %v198_v0  ;;  %188 = vmatprep.mubr.msk.bf16.mxu1 %vm199_vm0, %v198_v0  ;;  %v197_v4 = vld [vmem:[%s264_s2 + $0x8] sm:$0xff]  }
   0x3   :  { %177 = vmatpush3.bf16.msra.mxu0 %v194_v1  ;;  %185 = vmatpush3.bf16.msra.mxu1 %v195_v2  ;;  %v28_v5 = vld [vmem:[%s265_s1] sm:$0xff]  ;;  %v29_v6 = vld [vmem:[%s265_s1 + $0x8] sm:$0xff] }
   0x4   :  { %178 = vmatprep.subr.bf16.mxu0 %v198_v0  ;;  %186 = vmatprep.subr.bf16.mxu1 %v198_v0  ;;  %v21_v7 = vld [vmem:[%s266_s0] sm:$0xff]  ;;  %v30_v8 = vpack.c.bf16 %v29_v6, %v28_v5  ;;  %v22_v9 = vld [vmem:[%s266_s0 + $0x8] sm:$0xff] }
   0x5   :  { %v23_v10 = vpack.c.bf16 %v22_v9, %v21_v7  ;;  %v169_v13 = vld [vmem:[%s267_s4] ss:$0 sm:$0xff] }
   0x7   :  { %179 = vmatpush3.bf16.msra.mxu0 %v196_v3  ;;  %187 = vmatpush3.bf16.msra.mxu1 %v197_v4 }
   0xa   :  { %181 = vmatmul.mubr.msk.bf16.vlgmr.msra.gmra.mrb[0].mxu0 %vm47_vm1, %v30_v8  ;;  %189 = vmatmul.mubr.msk.bf16.vlgmr.msra.gmra.mrb[0].mxu1 %vm47_vm1, %v23_v10 }
  0xdd   :  { %v85_v11 = vpop.f32.mrb[0].mxu0  ;;  %v141_v12 = vpop.f32.mrb[0].mxu1 }
  0xde   :  { %v182_v14 = vpop.f32.mrb[1].mxu0  ;;  %v142_v15 = vadd.f32 %v141_v12, %v85_v11  ;;  %v190_v16 = vpop.f32.mrb[1].mxu1 }
  0xdf   :  { %v88_v17 = vpop.f32.mrb[2].mxu0  ;;  %v144_v18 = vpop.f32.mrb[2].mxu1 }
  0xe0   :  { %v183_v19 = vpop.f32.mrb[3].mxu0  ;;  %v155_v20 = vadd.f32 %v169_v13, %v142_v15  ;;  %v145_v21 = vadd.f32 %v144_v18, %v88_v17  ;;  %v191_v22 = vpop.f32.mrb[3].mxu1 }
  0xe2   :  { %157 = vst [vmem:[%s268_s5] sm:$0xff] %v155_v20  ;;  %v156_v23 = vadd.f32 %v169_v13, %v145_v21 }
  0xe4   :  { %158 = vst [vmem:[%s268_s5 + $0x8] sm:$0xff] %v156_v23 }

// kernel: decoder_forward.6
= control target key start
LH: loop header
LB: loop body
LE: loop exit
PB: predicated region body
PF: predicated region fallthrough
CT: control target
= control target key end

     0   :  { %vm57_vm0 = vcmask 254976   ;;  %v1977_v0 = vmov 0.0   ;;  %vm1978_vm1 = vmmov 0   ;;  %vm92_vm2 = vcmask 261120   ;;  %s1979_s23 = smov 32   ;;  %s1980_s27 = smov 64   ;;  %s2462_s2 = inlined_call_operand.vmem [shape: bf16[2,32,128], index: 2, kind: input, shape index: {}]   ;;  %s2463_s0 = inlined_call_operand.vmem [shape: bf16[2,8,2,128], index: 0, kind: input, shape index: {}, may-alias: {0,1}]   ;;  %s2464_s1 = inlined_call_operand.vmem [shape: bf16[2,8,2,128], index: 1, kind: input, shape index: {}, may-alias: {0,1}]   ;;  %s2465_s3 = inlined_call_operand.vmem [shape: f32[8,2,32], index: 3, kind: output, shape index: {0}]   ;;  %s2466_s4 = inlined_call_operand.vmem [shape: f32[8,2,32], index: 4, kind: output, shape index: {1}]  }
   0x1   :  { %1711 = vmatprep.subr.bf16.mxu0 %v1977_v0  ;;  %v2012_v1 = vld [vmem:[%s2462_s2] sm:$0xff]   ;;  %1719 = vmatprep.subr.bf16.mxu1 %v1977_v0  ;;  %58 = vst.msk [vmem:[#allocation2] sm:$0x3] %vm57_vm0, %v1977_v0  ;;  %59 = vst.msk [vmem:[#allocation2 + $0x2] sm:$0x3] %vm57_vm0, %v1977_v0  ;;  %v2026_v2 = vld [vmem:[%s2462_s2 + $0x10] sm:$0xff]  }
   0x2   :  { %60 = vst.msk [vmem:[#allocation3] sm:$0x3] %vm57_vm0, %v1977_v0  ;;  %61 = vst.msk [vmem:[#allocation3 + $0x2] sm:$0x3] %vm57_vm0, %v1977_v0  ;;  %1715 = vmatprep.mubr.msk.bf16.mxu0 %vm1978_vm1, %v1977_v0  ;;  %1723 = vmatprep.mubr.msk.bf16.mxu1 %vm1978_vm1, %v1977_v0  ;;  %v2036_v3 = vld [vmem:[%s2462_s2 + $0x8] sm:$0xff]   ;;  %v2043_v4 = vld [vmem:[%s2462_s2 + $0x18] sm:$0xff]  }
   0x3   :  { %1712 = vmatpush3.bf16.msra.mxu0 %v2012_v1  ;;  %1720 = vmatpush3.bf16.msra.mxu1 %v2026_v2  ;;  %v77_v11 = vld [vmem:[%s2463_s0] sm:$0x1]  ;;  %v1599_v12 = vld [vmem:[%s2464_s1 + $0xf] sm:$0x1]  ;;  %v1608_v57 = vld [vmem:[%s2463_s0 + $0x1] sm:$0x1] }
   0x4   :  { %1713 = vmatprep.subr.bf16.mxu0 %v1977_v0  ;;  %1721 = vmatprep.subr.bf16.mxu1 %v1977_v0  ;;  %v78_v13 = vunpack.c.l.bf16 %v77_v11  ;;  %v139_v14 = vunpack.c.l.bf16 %v1599_v12  ;;  %v295_v58 = vunpack.c.l.bf16 %v1608_v57  ;;  %v1610_v59 = vld [vmem:[%s2464_s1 + $0xe] sm:$0x1]  ;;  %s1982_s8 = smov 96  }
   0x5   :  { %v346_v63 = vunpack.c.l.bf16 %v1610_v59 }
   0x7   :  { %1714 = vmatpush3.bf16.msra.mxu0 %v2036_v3  ;;  %1722 = vmatpush3.bf16.msra.mxu1 %v2043_v4 }
   0x8   :  { %v71_v5 = vld [vmem:[#allocation2] sm:$0x3]  ;;  %v74_v6 = vld [vmem:[#allocation2 + $0x2] sm:$0x3]  ;;  %1727 = vmatprep.subr.bf16.mxu0 %v1977_v0  ;;  %1735 = vmatprep.subr.bf16.mxu1 %v1977_v0 }
   0x9   :  { %v79_v7 = vpack.c.bf16 %v71_v5, %v71_v5  ;;  %v140_v8 = vpack.c.bf16 %v74_v6, %v74_v6  ;;  %v1604_v9 = vld.sshfl [vmem:[#allocation3] sm:$0x3 pattern:$0x76325410] }
   0xa   :  { %212 = vrot.lane.b32.xlu1 %v1604_v9, %s1979_s23  ;;  %v1606_v10 = vld.sshfl [vmem:[#allocation3 + $0x2] sm:$0x3 pattern:$0x76325410] }
   0xb   :  { %1716 = vmatmul.mubr.msk.bf16.vlgmr.msra.gmra.mrb[0].mxu0 %vm92_vm2, %v79_v7  ;;  %1724 = vmatmul.mubr.msk.bf16.vlgmr.msra.gmra.mrb[0].mxu1 %vm92_vm2, %v140_v8 }
   0xc   :  { %1728 = vmatpush3.bf16.msra.mxu0 %v2012_v1  ;;  %1736 = vmatpush3.bf16.msra.mxu1 %v2026_v2 }
   0xd   :  { %1729 = vmatprep.subr.bf16.mxu0 %v1977_v0  ;;  %1731 = vmatprep.mubr.msk.bf16.mxu0 %vm1978_vm1, %v1977_v0 }
   0xe   :  { %247 = vrot.lane.b32.xlu1 %v1606_v10, %s1979_s23  ;;  %1737 = vmatprep.subr.bf16.mxu1 %v1977_v0 }
   0xf   :  { %1739 = vmatprep.mubr.msk.bf16.mxu1 %vm1978_vm1, %v1977_v0 }
  0x10   :  { %1730 = vmatpush3.bf16.msra.mxu0 %v2036_v3  ;;  %1738 = vmatpush3.bf16.msra.mxu1 %v2043_v4 }
  0x11   :  { %1743 = vmatprep.subr.bf16.mxu0 %v1977_v0  ;;  %1751 = vmatprep.subr.bf16.mxu1 %v1977_v0 }
  0x7c   :  { %v213_v39 = vpop.permute.xlu1 %212 }
  0x80   :  { %v248_v41 = vpop.permute.xlu1 %247 }
  0xde   :  { %v130_v15 = vpop.f32.mrb[0].mxu0  ;;  %v190_v16 = vpop.f32.mrb[0].mxu1 }
  0xdf   :  { %v136_v17 = vadd.f32 %v130_v15, %v78_v13  ;;  %v1717_v18 = vpop.f32.mrb[1].mxu0  ;;  %v196_v19 = vadd.f32 %v190_v16, %v139_v14  ;;  %v1725_v20 = vpop.f32.mrb[1].mxu1 }
  0xe0   :  { %v133_v21 = vpop.f32.mrb[2].mxu0  ;;  %v193_v22 = vpop.f32.mrb[2].mxu1 }
  0xe1   :  { %1849 = vtanh.f32 %v136_v17  ;;  %v1718_v23 = vpop.f32.mrb[3].mxu0  ;;  %v1726_v24 = vpop.f32.mrb[3].mxu1  ;;  %v1603_v27 = vmul.f32 -1.442695, %v136_v17  ;;  %v1605_v28 = vmul.f32 -1.442695, %v196_v19 }
  0xe2   :  { %1851 = vtanh.f32 %v196_v19 }
  0xe3   :  { %1853 = vpow2.f32 %v1603_v27 }
  0xe4   :  { %1855 = vpow2.f32 %v1605_v28 }
  0xeb   :  { %v1850_v25 = vpop.eup %1849 }
  0xec   :  { %217 = vrot.lane.b32.xlu0 %v1850_v25, %s1980_s27  ;;  %v1852_v26 = vpop.eup %1851 }
  0xed   :  { %v1854_v29 = vpop.eup %1853 }
  0xee   :  { %v200_v30 = vadd.f32 1.0, %v1854_v29  ;;  %v1856_v31 = vpop.eup %1855 }
  0xef   :  { %v235_v32 = vadd.f32 1.0, %v1856_v31 }
  0xf0   :  { %252 = vrot.lane.b32.xlu0 %v1852_v26, %s1980_s27  ;;  %1857 = vrcp.f32 %v200_v30 }
  0xf1   :  { %1859 = vrcp.f32 %v235_v32 }
  0xfa   :  { %v1858_v33 = vpop.eup %1857 }
  0xfb   :  { %v1860_v36 = vpop.eup %1859  ;;  %v215_v40 = vmul.f32 %v1858_v33, %v213_v39 }
  0xfc   :  { %v250_v44 = vmul.f32 %v1860_v36, %v248_v41 }
 0x15e   :  { %v218_v34 = vpop.permute.xlu0 %217 }
 0x15f   :  { %v220_v35 = vmul.f32 %v1858_v33, %v218_v34 }
 0x161   :  { %222 = vrot.lane.b32.xlu0 %v220_v35, %s1979_s23 }
 0x162   :  { %v253_v37 = vpop.permute.xlu0 %252 }
 0x163   :  { %v255_v38 = vmul.f32 %v1860_v36, %v253_v37 }
 0x165   :  { %257 = vrot.lane.b32.xlu1 %v255_v38, %s1979_s23 }
 0x1d3   :  { %v223_v42 = vpop.permute.xlu0 %222 }
 0x1d4   :  { %v2076_v43 = vadd.f32 %v223_v42, %v215_v40  ;;  %v1616_v42 = vld [vmem:[%s2463_s0 + $0x2] sm:$0x1] }
 0x1d6   :  { %1861 = vtanh.f32 %v2076_v43 }
 0x1d7   :  { %v258_v45 = vpop.permute.xlu1 %257 }
 0x1d8   :  { %v2079_v46 = vadd.f32 %v258_v45, %v250_v44  ;;  %v1618_v44 = vld [vmem:[%s2464_s1 + $0xd] sm:$0x1] }
 0x1da   :  { %1863 = vtanh.f32 %v2079_v46 }
 0x1e0   :  { %v1862_v47 = vpop.eup %1861 }
 0x1e1   :  { %228 = vrot.lane.b32.xlu0 %v1862_v47, %s1980_s27 }
 0x1e4   :  { %v1864_v48 = vpop.eup %1863 }
 0x1e5   :  { %263 = vrot.lane.b32.xlu1 %v1864_v48, %s1980_s27  ;;  %v522_v48 = vunpack.c.l.bf16 %v1618_v44 }
 0x253   :  { %v229_v49 = vpop.permute.xlu0 %228 }
 0x254   :  { %v2084_v50 = vmul.f32 %v1858_v33, %v229_v49 }
 0x256   :  { %v296_v51 = vpack.c.bf16 %v2084_v50, %v2084_v50 }
 0x257   :  { %v264_v52 = vpop.permute.xlu1 %263 }
 0x258   :  { %v2088_v53 = vmul.f32 %v1860_v36, %v264_v52  ;;  %298 = vrot.lane.b32.xlu0 %v296_v51, %s1979_s23 }
 0x25a   :  { %v347_v54 = vpack.c.bf16 %v2088_v53, %v2088_v53 }
 0x25c   :  { %349 = vrot.lane.b32.xlu1 %v347_v54, %s1979_s23 }
 0x2ca   :  { %v299_v55 = vpop.permute.xlu0 %298 }
 0x2cb   :  { %1732 = vmatmul.mubr.msk.bf16.vlgmr.msra.gmra.mrb[4].mxu0 %vm92_vm2, %v299_v55 }
 0x2cc   :  { %1744 = vmatpush3.bf16.msra.mxu0 %v2012_v1  ;;  %1747 = vmatprep.mubr.msk.bf16.mxu0 %vm1978_vm1, %v1977_v0 }
 0x2cd   :  { %1745 = vmatprep.subr.bf16.mxu0 %v1977_v0 }
 0x2ce   :  { %v350_v56 = vpop.permute.xlu1 %349 }
 0x2cf   :  { %1740 = vmatmul.mubr.msk.bf16.vlgmr.msra.gmra.mrb[4].mxu1 %vm92_vm2, %v350_v56 }
 0x2d0   :  { %1752 = vmatpush3.bf16.msra.mxu1 %v2026_v2  ;;  %1746 = vmatpush3.bf16.msra.mxu0 %v2036_v3 }
 0x2d1   :  { %1753 = vmatprep.subr.bf16.mxu1 %v1977_v0  ;;  %1755 = vmatprep.mubr.msk.bf16.mxu1 %vm1978_vm1, %v1977_v0 }
 0x2d2   :  { %1759 = vmatprep.subr.bf16.mxu0 %v1977_v0 }
 0x2d4   :  { %1754 = vmatpush3.bf16.msra.mxu1 %v2043_v4 }
 0x2d5   :  { %1767 = vmatprep.subr.bf16.mxu1 %v1977_v0 }
 0x39e   :  { %v337_v60 = vpop.f32.mrb[4].mxu0 }
 0x39f   :  { %v343_v61 = vadd.f32 %v337_v60, %v295_v58  ;;  %v1733_v62 = vpop.f32.mrb[5].mxu0 }
 0x3a0   :  { %v340_v5 = vpop.f32.mrb[6].mxu0 }
 0x3a1   :  { %1865 = vtanh.f32 %v343_v61  ;;  %v1734_v6 = vpop.f32.mrb[7].mxu0  ;;  %v1612_v14 = vmul.f32 -1.442695, %v343_v61 }
 0x3a2   :  { %v388_v7 = vpop.f32.mrb[4].mxu1 }
 0x3a3   :  { %v394_v8 = vadd.f32 %v388_v7, %v346_v63  ;;  %v1741_v9 = vpop.f32.mrb[5].mxu1 }
 0x3a4   :  { %v391_v10 = vpop.f32.mrb[6].mxu1 }
 0x3a5   :  { %1867 = vtanh.f32 %v394_v8  ;;  %v1742_v11 = vpop.f32.mrb[7].mxu1  ;;  %v1613_v15 = vmul.f32 -1.442695, %v394_v8 }
 0x3a6   :  { %1869 = vpow2.f32 %v1612_v14 }
 0x3a7   :  { %1871 = vpow2.f32 %v1613_v15 }
 0x3ab   :  { %v1866_v12 = vpop.eup %1865 }
 0x3ac   :  { %404 = vrot.lane.b32.xlu0 %v1866_v12, %s1980_s27 }
 0x3af   :  { %v1868_v13 = vpop.eup %1867 }
 0x3b0   :  { %428 = vrot.lane.b32.xlu1 %v1868_v13, %s1980_s27  ;;  %v1870_v16 = vpop.eup %1869 }
 0x3b1   :  { %v398_v17 = vadd.f32 1.0, %v1870_v16  ;;  %v1872_v18 = vpop.eup %1871 }
 0x3b2   :  { %v422_v19 = vadd.f32 1.0, %v1872_v18 }
 0x3b3   :  { %1873 = vrcp.f32 %v398_v17 }
 0x3b4   :  { %1875 = vrcp.f32 %v422_v19 }
 0x3bd   :  { %v1874_v20 = vpop.eup %1873 }
 0x3be   :  { %v1876_v23 = vpop.eup %1875  ;;  %v402_v26 = vmul.f32 %v1874_v20, %v2076_v43  ;;  %v471_v43 = vunpack.c.l.bf16 %v1616_v42 }
 0x3bf   :  { %v426_v29 = vmul.f32 %v1876_v23, %v2079_v46 }
 0x41e   :  { %v405_v21 = vpop.permute.xlu0 %404 }
 0x41f   :  { %v407_v22 = vmul.f32 %v1874_v20, %v405_v21 }
 0x421   :  { %409 = vrot.lane.b32.xlu0 %v407_v22, %s1979_s23 }
 0x422   :  { %v429_v24 = vpop.permute.xlu1 %428 }
 0x423   :  { %v431_v25 = vmul.f32 %v1876_v23, %v429_v24 }
 0x425   :  { %433 = vrot.lane.b32.xlu1 %v431_v25, %s1979_s23 }
 0x493   :  { %v410_v27 = vpop.permute.xlu0 %409 }
 0x494   :  { %v2119_v28 = vadd.f32 %v410_v27, %v402_v26 }
 0x496   :  { %1877 = vtanh.f32 %v2119_v28 }
 0x497   :  { %v434_v30 = vpop.permute.xlu1 %433 }
 0x498   :  { %v2123_v31 = vadd.f32 %v434_v30, %v426_v29  ;;  %v1624_v29 = vld [vmem:[%s2463_s0 + $0x3] sm:$0x1] }
 0x499   :  { %v647_v30 = vunpack.c.l.bf16 %v1624_v29 }
 0x49a   :  { %1879 = vtanh.f32 %v2123_v31 }
 0x4a0   :  { %v1878_v32 = vpop.eup %1877 }
 0x4a1   :  { %415 = vrot.lane.b32.xlu0 %v1878_v32, %s1980_s27 }
 0x4a4   :  { %v1880_v33 = vpop.eup %1879 }
 0x4a5   :  { %439 = vrot.lane.b32.xlu1 %v1880_v33, %s1980_s27 }
 0x513   :  { %v416_v34 = vpop.permute.xlu0 %415 }
 0x514   :  { %v2128_v35 = vmul.f32 %v1874_v20, %v416_v34 }
 0x516   :  { %v472_v36 = vpack.c.bf16 %v2128_v35, %v2128_v35 }
 0x517   :  { %v440_v37 = vpop.permute.xlu1 %439 }
 0x518   :  { %v2132_v38 = vmul.f32 %v1876_v23, %v440_v37  ;;  %474 = vrot.lane.b32.xlu0 %v472_v36, %s1979_s23 }
 0x51a   :  { %v523_v39 = vpack.c.bf16 %v2132_v38, %v2132_v38 }
 0x51c   :  { %525 = vrot.lane.b32.xlu1 %v523_v39, %s1979_s23 }
 0x58a   :  { %v475_v40 = vpop.permute.xlu0 %474 }
 0x58b   :  { %1748 = vmatmul.mubr.msk.bf16.vlgmr.msra.gmra.mrb[8].mxu0 %vm92_vm2, %v475_v40 }
 0x58c   :  { %1760 = vmatpush3.bf16.msra.mxu0 %v2012_v1  ;;  %1763 = vmatprep.mubr.msk.bf16.mxu0 %vm1978_vm1, %v1977_v0 }
 0x58d   :  { %1761 = vmatprep.subr.bf16.mxu0 %v1977_v0 }
 0x58e   :  { %v526_v41 = vpop.permute.xlu1 %525 }
 0x58f   :  { %1756 = vmatmul.mubr.msk.bf16.vlgmr.msra.gmra.mrb[8].mxu1 %vm92_vm2, %v526_v41 }
 0x590   :  { %1768 = vmatpush3.bf16.msra.mxu1 %v2026_v2  ;;  %1762 = vmatpush3.bf16.msra.mxu0 %v2036_v3 }
 0x591   :  { %1769 = vmatprep.subr.bf16.mxu1 %v1977_v0  ;;  %1771 = vmatprep.mubr.msk.bf16.mxu1 %vm1978_vm1, %v1977_v0 }
 0x592   :  { %1775 = vmatprep.subr.bf16.mxu0 %v1977_v0 }
 0x594   :  { %1770 = vmatpush3.bf16.msra.mxu1 %v2043_v4 }
 0x595   :  { %1783 = vmatprep.subr.bf16.mxu1 %v1977_v0 }
 0x65e   :  { %v513_v45 = vpop.f32.mrb[8].mxu0 }
 0x65f   :  { %v519_v46 = vadd.f32 %v513_v45, %v471_v43  ;;  %v1749_v47 = vpop.f32.mrb[9].mxu0 }
 0x660   :  { %v516_v49 = vpop.f32.mrb[10].mxu0 }
 0x661   :  { %1881 = vtanh.f32 %v519_v46  ;;  %v1750_v51 = vpop.f32.mrb[11].mxu0  ;;  %v1620_v60 = vmul.f32 -1.442695, %v519_v46 }
 0x662   :  { %v564_v52 = vpop.f32.mrb[8].mxu1 }
 0x663   :  { %v570_v54 = vadd.f32 %v564_v52, %v522_v48  ;;  %v1757_v55 = vpop.f32.mrb[9].mxu1 }
 0x664   :  { %v567_v56 = vpop.f32.mrb[10].mxu1 }
 0x665   :  { %1883 = vtanh.f32 %v570_v54  ;;  %v1758_v57 = vpop.f32.mrb[11].mxu1  ;;  %v1621_v61 = vmul.f32 -1.442695, %v570_v54 }
 0x666   :  { %1885 = vpow2.f32 %v1620_v60 }
 0x667   :  { %1887 = vpow2.f32 %v1621_v61 }
 0x66b   :  { %v1882_v58 = vpop.eup %1881 }
 0x66c   :  { %580 = vrot.lane.b32.xlu0 %v1882_v58, %s1980_s27 }
 0x66f   :  { %v1884_v59 = vpop.eup %1883 }
 0x670   :  { %604 = vrot.lane.b32.xlu1 %v1884_v59, %s1980_s27  ;;  %v1886_v62 = vpop.eup %1885 }
 0x671   :  { %v574_v63 = vadd.f32 1.0, %v1886_v62  ;;  %v1888_v5 = vpop.eup %1887 }
 0x672   :  { %v598_v6 = vadd.f32 1.0, %v1888_v5 }
 0x673   :  { %1889 = vrcp.f32 %v574_v63 }
 0x674   :  { %1891 = vrcp.f32 %v598_v6 }
 0x67d   :  { %v1890_v7 = vpop.eup %1889 }
 0x67e   :  { %v1892_v10 = vpop.eup %1891  ;;  %v578_v13 = vmul.f32 %v1890_v7, %v2119_v28 }
 0x67f   :  { %v602_v16 = vmul.f32 %v1892_v10, %v2123_v31  ;;  %v1626_v31 = vld [vmem:[%s2464_s1 + $0xc] sm:$0x1] }
 0x680   :  { %v698_v36 = vunpack.c.l.bf16 %v1626_v31 }
 0x6de   :  { %v581_v8 = vpop.permute.xlu0 %580 }
 0x6df   :  { %v583_v9 = vmul.f32 %v1890_v7, %v581_v8 }
 0x6e1   :  { %585 = vrot.lane.b32.xlu0 %v583_v9, %s1979_s23 }
 0x6e2   :  { %v605_v11 = vpop.permute.xlu1 %604 }
 0x6e3   :  { %v607_v12 = vmul.f32 %v1892_v10, %v605_v11 }
 0x6e5   :  { %609 = vrot.lane.b32.xlu1 %v607_v12, %s1979_s23 }
 0x753   :  { %v586_v14 = vpop.permute.xlu0 %585 }
 0x754   :  { %v2163_v15 = vadd.f32 %v586_v14, %v578_v13 }
 0x756   :  { %1893 = vtanh.f32 %v2163_v15 }
 0x757   :  { %v610_v17 = vpop.permute.xlu1 %609 }
 0x758   :  { %v2167_v18 = vadd.f32 %v610_v17, %v602_v16 }
 0x75a   :  { %1895 = vtanh.f32 %v2167_v18 }
 0x760   :  { %v1894_v19 = vpop.eup %1893 }
 0x761   :  { %591 = vrot.lane.b32.xlu0 %v1894_v19, %s1980_s27 }
 0x764   :  { %v1896_v20 = vpop.eup %1895 }
 0x765   :  { %615 = vrot.lane.b32.xlu1 %v1896_v20, %s1980_s27  ;;  %v1634_v20 = vld [vmem:[%s2464_s1 + $0xb] sm:$0x1] }
 0x7d3   :  { %v592_v21 = vpop.permute.xlu0 %591 }
 0x7d4   :  { %v2172_v22 = vmul.f32 %v1890_v7, %v592_v21 }
 0x7d6   :  { %v648_v23 = vpack.c.bf16 %v2172_v22, %v2172_v22 }
 0x7d7   :  { %v616_v24 = vpop.permute.xlu1 %615 }
 0x7d8   :  { %v2176_v25 = vmul.f32 %v1892_v10, %v616_v24  ;;  %650 = vrot.lane.b32.xlu0 %v648_v23, %s1979_s23 }
 0x7da   :  { %v699_v26 = vpack.c.bf16 %v2176_v25, %v2176_v25 }
 0x7dc   :  { %701 = vrot.lane.b32.xlu1 %v699_v26, %s1979_s23  ;;  %v874_v26 = vunpack.c.l.bf16 %v1634_v20 }
 0x84a   :  { %v651_v27 = vpop.permute.xlu0 %650 }
 0x84b   :  { %1764 = vmatmul.mubr.msk.bf16.vlgmr.msra.gmra.mrb[12].mxu0 %vm92_vm2, %v651_v27 }
 0x84c   :  { %1776 = vmatpush3.bf16.msra.mxu0 %v2012_v1  ;;  %1779 = vmatprep.mubr.msk.bf16.mxu0 %vm1978_vm1, %v1977_v0 }
 0x84d   :  { %1777 = vmatprep.subr.bf16.mxu0 %v1977_v0 }
 0x84e   :  { %v702_v28 = vpop.permute.xlu1 %701 }
 0x84f   :  { %1772 = vmatmul.mubr.msk.bf16.vlgmr.msra.gmra.mrb[12].mxu1 %vm92_vm2, %v702_v28 }
 0x850   :  { %1784 = vmatpush3.bf16.msra.mxu1 %v2026_v2  ;;  %1778 = vmatpush3.bf16.msra.mxu0 %v2036_v3 }
 0x851   :  { %1785 = vmatprep.subr.bf16.mxu1 %v1977_v0  ;;  %1787 = vmatprep.mubr.msk.bf16.mxu1 %vm1978_vm1, %v1977_v0 }
 0x852   :  { %1791 = vmatprep.subr.bf16.mxu0 %v1977_v0 }
 0x854   :  { %1786 = vmatpush3.bf16.msra.mxu1 %v2043_v4 }
 0x855   :  { %1799 = vmatprep.subr.bf16.mxu1 %v1977_v0 }
 0x91e   :  { %v689_v32 = vpop.f32.mrb[12].mxu0 }
 0x91f   :  { %v695_v33 = vadd.f32 %v689_v32, %v647_v30  ;;  %v1765_v34 = vpop.f32.mrb[13].mxu0 }
 0x920   :  { %v692_v37 = vpop.f32.mrb[14].mxu0 }
 0x921   :  { %1897 = vtanh.f32 %v695_v33  ;;  %v1766_v39 = vpop.f32.mrb[15].mxu0  ;;  %v1628_v47 = vmul.f32 -1.442695, %v695_v33 }
 0x922   :  { %v740_v40 = vpop.f32.mrb[12].mxu1 }
 0x923   :  { %v746_v41 = vadd.f32 %v740_v40, %v698_v36  ;;  %v1773_v42 = vpop.f32.mrb[13].mxu1 }
 0x924   :  { %v743_v43 = vpop.f32.mrb[14].mxu1 }
 0x925   :  { %1899 = vtanh.f32 %v746_v41  ;;  %v1774_v44 = vpop.f32.mrb[15].mxu1  ;;  %v1629_v48 = vmul.f32 -1.442695, %v746_v41 }
 0x926   :  { %1901 = vpow2.f32 %v1628_v47 }
 0x927   :  { %1903 = vpow2.f32 %v1629_v48 }
 0x92b   :  { %v1898_v45 = vpop.eup %1897 }
 0x92c   :  { %756 = vrot.lane.b32.xlu0 %v1898_v45, %s1980_s27 }
 0x92f   :  { %v1900_v46 = vpop.eup %1899 }
 0x930   :  { %780 = vrot.lane.b32.xlu1 %v1900_v46, %s1980_s27  ;;  %v1902_v49 = vpop.eup %1901 }
 0x931   :  { %v750_v51 = vadd.f32 1.0, %v1902_v49  ;;  %v1904_v52 = vpop.eup %1903 }
 0x932   :  { %v774_v54 = vadd.f32 1.0, %v1904_v52 }
 0x933   :  { %1905 = vrcp.f32 %v750_v51 }
 0x934   :  { %1907 = vrcp.f32 %v774_v54 }
 0x93d   :  { %v1906_v55 = vpop.eup %1905 }
 0x93e   :  { %v1908_v58 = vpop.eup %1907  ;;  %v754_v61 = vmul.f32 %v1906_v55, %v2163_v15 }
 0x93f   :  { %v778_v5 = vmul.f32 %v1908_v58, %v2167_v18  ;;  %v1632_v18 = vld [vmem:[%s2463_s0 + $0x4] sm:$0x1] }
 0x940   :  { %v823_v19 = vunpack.c.l.bf16 %v1632_v18 }
 0x99e   :  { %v757_v56 = vpop.permute.xlu0 %756 }
 0x99f   :  { %v759_v57 = vmul.f32 %v1906_v55, %v757_v56 }
 0x9a1   :  { %761 = vrot.lane.b32.xlu0 %v759_v57, %s1979_s23 }
 0x9a2   :  { %v781_v59 = vpop.permute.xlu1 %780 }
 0x9a3   :  { %v783_v60 = vmul.f32 %v1908_v58, %v781_v59 }
 0x9a5   :  { %785 = vrot.lane.b32.xlu1 %v783_v60, %s1979_s23 }
 0xa13   :  { %v762_v62 = vpop.permute.xlu0 %761 }
 0xa14   :  { %v2207_v63 = vadd.f32 %v762_v62, %v754_v61 }
 0xa16   :  { %1909 = vtanh.f32 %v2207_v63 }
 0xa17   :  { %v786_v6 = vpop.permute.xlu1 %785 }
 0xa18   :  { %v2211_v7 = vadd.f32 %v786_v6, %v778_v5 }
 0xa1a   :  { %1911 = vtanh.f32 %v2211_v7 }
 0xa20   :  { %v1910_v8 = vpop.eup %1909 }
 0xa21   :  { %767 = vrot.lane.b32.xlu0 %v1910_v8, %s1980_s27 }
 0xa24   :  { %v1912_v9 = vpop.eup %1911 }
 0xa25   :  { %791 = vrot.lane.b32.xlu1 %v1912_v9, %s1980_s27  ;;  %v1640_v9 = vld [vmem:[%s2463_s0 + $0x5] sm:$0x1] }
 0xa93   :  { %v768_v10 = vpop.permute.xlu0 %767 }
 0xa94   :  { %v2216_v11 = vmul.f32 %v1906_v55, %v768_v10  ;;  %v999_v10 = vunpack.c.l.bf16 %v1640_v9 }
 0xa96   :  { %v824_v12 = vpack.c.bf16 %v2216_v11, %v2216_v11 }
 0xa97   :  { %v792_v13 = vpop.permute.xlu1 %791 }
 0xa98   :  { %v2220_v14 = vmul.f32 %v1908_v58, %v792_v13  ;;  %826 = vrot.lane.b32.xlu0 %v824_v12, %s1979_s23  ;;  %v1642_v12 = vld [vmem:[%s2464_s1 + $0xa] sm:$0x1] }
 0xa9a   :  { %v875_v15 = vpack.c.bf16 %v2220_v14, %v2220_v14 }
 0xa9c   :  { %877 = vrot.lane.b32.xlu1 %v875_v15, %s1979_s23 }
 0xb0a   :  { %v827_v16 = vpop.permute.xlu0 %826 }
 0xb0b   :  { %1780 = vmatmul.mubr.msk.bf16.vlgmr.msra.gmra.mrb[16].mxu0 %vm92_vm2, %v827_v16 }
 0xb0c   :  { %1792 = vmatpush3.bf16.msra.mxu0 %v2012_v1  ;;  %1795 = vmatprep.mubr.msk.bf16.mxu0 %vm1978_vm1, %v1977_v0 }
 0xb0d   :  { %1793 = vmatprep.subr.bf16.mxu0 %v1977_v0 }
 0xb0e   :  { %v878_v17 = vpop.permute.xlu1 %877 }
 0xb0f   :  { %1788 = vmatmul.mubr.msk.bf16.vlgmr.msra.gmra.mrb[16].mxu1 %vm92_vm2, %v878_v17  ;;  %v1050_v17 = vunpack.c.l.bf16 %v1642_v12 }
 0xb10   :  { %1800 = vmatpush3.bf16.msra.mxu1 %v2026_v2  ;;  %1794 = vmatpush3.bf16.msra.mxu0 %v2036_v3 }
 0xb11   :  { %1801 = vmatprep.subr.bf16.mxu1 %v1977_v0  ;;  %1803 = vmatprep.mubr.msk.bf16.mxu1 %vm1978_vm1, %v1977_v0 }
 0xb12   :  { %1807 = vmatprep.subr.bf16.mxu0 %v1977_v0 }
 0xb14   :  { %1802 = vmatpush3.bf16.msra.mxu1 %v2043_v4 }
 0xb15   :  { %1815 = vmatprep.subr.bf16.mxu1 %v1977_v0 }
 0xbde   :  { %v865_v21 = vpop.f32.mrb[16].mxu0 }
 0xbdf   :  { %v871_v23 = vadd.f32 %v865_v21, %v823_v19  ;;  %v1781_v24 = vpop.f32.mrb[17].mxu0 }
 0xbe0   :  { %v868_v27 = vpop.f32.mrb[18].mxu0 }
 0xbe1   :  { %1913 = vtanh.f32 %v871_v23  ;;  %v1782_v28 = vpop.f32.mrb[19].mxu0  ;;  %v1636_v37 = vmul.f32 -1.442695, %v871_v23 }
 0xbe2   :  { %v916_v29 = vpop.f32.mrb[16].mxu1 }
 0xbe3   :  { %v922_v30 = vadd.f32 %v916_v29, %v874_v26  ;;  %v1789_v31 = vpop.f32.mrb[17].mxu1 }
 0xbe4   :  { %v919_v32 = vpop.f32.mrb[18].mxu1 }
 0xbe5   :  { %1915 = vtanh.f32 %v922_v30  ;;  %v1790_v33 = vpop.f32.mrb[19].mxu1  ;;  %v1637_v39 = vmul.f32 -1.442695, %v922_v30 }
 0xbe6   :  { %1917 = vpow2.f32 %v1636_v37 }
 0xbe7   :  { %1919 = vpow2.f32 %v1637_v39 }
 0xbeb   :  { %v1914_v34 = vpop.eup %1913 }
 0xbec   :  { %932 = vrot.lane.b32.xlu0 %v1914_v34, %s1980_s27 }
 0xbef   :  { %v1916_v36 = vpop.eup %1915 }
 0xbf0   :  { %956 = vrot.lane.b32.xlu1 %v1916_v36, %s1980_s27  ;;  %v1918_v40 = vpop.eup %1917 }
 0xbf1   :  { %v926_v41 = vadd.f32 1.0, %v1918_v40  ;;  %v1920_v42 = vpop.eup %1919 }
 0xbf2   :  { %v950_v43 = vadd.f32 1.0, %v1920_v42 }
 0xbf3   :  { %1921 = vrcp.f32 %v926_v41 }
 0xbf4   :  { %1923 = vrcp.f32 %v950_v43 }
 0xbfd   :  { %v1922_v44 = vpop.eup %1921 }
 0xbfe   :  { %v1924_v47 = vpop.eup %1923  ;;  %v930_v51 = vmul.f32 %v1922_v44, %v2207_v63 }
 0xbff   :  { %v954_v55 = vmul.f32 %v1924_v47, %v2211_v7 }
 0xc5e   :  { %v933_v45 = vpop.permute.xlu0 %932 }
 0xc5f   :  { %v935_v46 = vmul.f32 %v1922_v44, %v933_v45 }
 0xc61   :  { %937 = vrot.lane.b32.xlu0 %v935_v46, %s1979_s23 }
 0xc62   :  { %v957_v48 = vpop.permute.xlu1 %956 }
 0xc63   :  { %v959_v49 = vmul.f32 %v1924_v47, %v957_v48 }
 0xc65   :  { %961 = vrot.lane.b32.xlu1 %v959_v49, %s1979_s23 }
 0xcd3   :  { %v938_v52 = vpop.permute.xlu0 %937 }
 0xcd4   :  { %v2251_v54 = vadd.f32 %v938_v52, %v930_v51 }
 0xcd6   :  { %1925 = vtanh.f32 %v2251_v54 }
 0xcd7   :  { %v962_v56 = vpop.permute.xlu1 %961 }
 0xcd8   :  { %v2255_v57 = vadd.f32 %v962_v56, %v954_v55 }
 0xcda   :  { %1927 = vtanh.f32 %v2255_v57 }
 0xce0   :  { %v1926_v58 = vpop.eup %1925 }
 0xce1   :  { %943 = vrot.lane.b32.xlu0 %v1926_v58, %s1980_s27 }
 0xce4   :  { %v1928_v59 = vpop.eup %1927 }
 0xce5   :  { %967 = vrot.lane.b32.xlu1 %v1928_v59, %s1980_s27 }
 0xd53   :  { %v944_v60 = vpop.permute.xlu0 %943 }
 0xd54   :  { %v2260_v61 = vmul.f32 %v1922_v44, %v944_v60 }
 0xd56   :  { %v1000_v62 = vpack.c.bf16 %v2260_v61, %v2260_v61 }
 0xd57   :  { %v968_v63 = vpop.permute.xlu1 %967 }
 0xd58   :  { %v2264_v5 = vmul.f32 %v1924_v47, %v968_v63  ;;  %1002 = vrot.lane.b32.xlu0 %v1000_v62, %s1979_s23  ;;  %v1650_v63 = vld [vmem:[%s2464_s1 + $0x9] sm:$0x1] }
 0xd5a   :  { %v1051_v6 = vpack.c.bf16 %v2264_v5, %v2264_v5 }
 0xd5c   :  { %1053 = vrot.lane.b32.xlu1 %v1051_v6, %s1979_s23 }
 0xdca   :  { %v1003_v7 = vpop.permute.xlu0 %1002 }
 0xdcb   :  { %1796 = vmatmul.mubr.msk.bf16.vlgmr.msra.gmra.mrb[20].mxu0 %vm92_vm2, %v1003_v7 }
 0xdcc   :  { %1808 = vmatpush3.bf16.msra.mxu0 %v2012_v1  ;;  %1811 = vmatprep.mubr.msk.bf16.mxu0 %vm1978_vm1, %v1977_v0 }
 0xdcd   :  { %1809 = vmatprep.subr.bf16.mxu0 %v1977_v0 }
 0xdce   :  { %v1054_v8 = vpop.permute.xlu1 %1053 }
 0xdcf   :  { %1804 = vmatmul.mubr.msk.bf16.vlgmr.msra.gmra.mrb[20].mxu1 %vm92_vm2, %v1054_v8 }
 0xdd0   :  { %1816 = vmatpush3.bf16.msra.mxu1 %v2026_v2  ;;  %1810 = vmatpush3.bf16.msra.mxu0 %v2036_v3 }
 0xdd1   :  { %1817 = vmatprep.subr.bf16.mxu1 %v1977_v0  ;;  %1819 = vmatprep.mubr.msk.bf16.mxu1 %vm1978_vm1, %v1977_v0 }
 0xdd2   :  { %1823 = vmatprep.subr.bf16.mxu0 %v1977_v0 }
 0xdd4   :  { %1818 = vmatpush3.bf16.msra.mxu1 %v2043_v4 }
 0xdd5   :  { %1831 = vmatprep.subr.bf16.mxu1 %v1977_v0 }
 0xe9e   :  { %v1041_v13 = vpop.f32.mrb[20].mxu0 }
 0xe9f   :  { %v1047_v15 = vadd.f32 %v1041_v13, %v999_v10  ;;  %v1797_v16 = vpop.f32.mrb[21].mxu0 }
 0xea0   :  { %v1044_v18 = vpop.f32.mrb[22].mxu0 }
 0xea1   :  { %1929 = vtanh.f32 %v1047_v15  ;;  %v1798_v19 = vpop.f32.mrb[23].mxu0  ;;  %v1644_v29 = vmul.f32 -1.442695, %v1047_v15 }
 0xea2   :  { %v1092_v20 = vpop.f32.mrb[20].mxu1 }
 0xea3   :  { %v1098_v21 = vadd.f32 %v1092_v20, %v1050_v17  ;;  %v1805_v23 = vpop.f32.mrb[21].mxu1 }
 0xea4   :  { %v1095_v24 = vpop.f32.mrb[22].mxu1 }
 0xea5   :  { %1931 = vtanh.f32 %v1098_v21  ;;  %v1806_v26 = vpop.f32.mrb[23].mxu1  ;;  %v1645_v30 = vmul.f32 -1.442695, %v1098_v21 }
 0xea6   :  { %1933 = vpow2.f32 %v1644_v29 }
 0xea7   :  { %1935 = vpow2.f32 %v1645_v30 }
 0xeab   :  { %v1930_v27 = vpop.eup %1929 }
 0xeac   :  { %1108 = vrot.lane.b32.xlu0 %v1930_v27, %s1980_s27 }
 0xeaf   :  { %v1932_v28 = vpop.eup %1931 }
 0xeb0   :  { %1132 = vrot.lane.b32.xlu1 %v1932_v28, %s1980_s27  ;;  %v1934_v31 = vpop.eup %1933 }
 0xeb1   :  { %v1102_v32 = vadd.f32 1.0, %v1934_v31  ;;  %v1936_v33 = vpop.eup %1935 }
 0xeb2   :  { %v1126_v34 = vadd.f32 1.0, %v1936_v33 }
 0xeb3   :  { %1937 = vrcp.f32 %v1102_v32 }
 0xeb4   :  { %1939 = vrcp.f32 %v1126_v34 }
 0xebd   :  { %v1938_v36 = vpop.eup %1937 }
 0xebe   :  { %v1940_v40 = vpop.eup %1939  ;;  %v1106_v43 = vmul.f32 %v1938_v36, %v2251_v54 }
 0xebf   :  { %v1130_v46 = vmul.f32 %v1940_v40, %v2255_v57 }
 0xf1e   :  { %v1109_v37 = vpop.permute.xlu0 %1108 }
 0xf1f   :  { %v1111_v39 = vmul.f32 %v1938_v36, %v1109_v37 }
 0xf21   :  { %1113 = vrot.lane.b32.xlu0 %v1111_v39, %s1979_s23 }
 0xf22   :  { %v1133_v41 = vpop.permute.xlu1 %1132 }
 0xf23   :  { %v1135_v42 = vmul.f32 %v1940_v40, %v1133_v41 }
 0xf25   :  { %1137 = vrot.lane.b32.xlu1 %v1135_v42, %s1979_s23 }
 0xf93   :  { %v1114_v44 = vpop.permute.xlu0 %1113 }
 0xf94   :  { %v2295_v45 = vadd.f32 %v1114_v44, %v1106_v43 }
 0xf96   :  { %1941 = vtanh.f32 %v2295_v45 }
 0xf97   :  { %v1138_v47 = vpop.permute.xlu1 %1137 }
 0xf98   :  { %v2299_v48 = vadd.f32 %v1138_v47, %v1130_v46 }
 0xf9a   :  { %1943 = vtanh.f32 %v2299_v48 }
 0xfa0   :  { %v1942_v49 = vpop.eup %1941 }
 0xfa1   :  { %1119 = vrot.lane.b32.xlu0 %v1942_v49, %s1980_s27  ;;  %v1656_v49 = vld [vmem:[%s2463_s0 + $0x7] sm:$0x1] }
 0xfa4   :  { %v1944_v51 = vpop.eup %1943 }
 0xfa5   :  { %1143 = vrot.lane.b32.xlu1 %v1944_v51, %s1980_s27  ;;  %v1351_v51 = vunpack.c.l.bf16 %v1656_v49 }
0x1013   :  { %v1120_v52 = vpop.permute.xlu0 %1119 }
0x1014   :  { %v2304_v54 = vmul.f32 %v1938_v36, %v1120_v52  ;;  %v1658_v52 = vld [vmem:[%s2464_s1 + $0x8] sm:$0x1] }
0x1016   :  { %v1176_v55 = vpack.c.bf16 %v2304_v54, %v2304_v54 }
0x1017   :  { %v1144_v56 = vpop.permute.xlu1 %1143 }
0x1018   :  { %v2308_v58 = vmul.f32 %v1940_v40, %v1144_v56  ;;  %1178 = vrot.lane.b32.xlu0 %v1176_v55, %s1979_s23 }
0x101a   :  { %v1227_v57 = vpack.c.bf16 %v2308_v58, %v2308_v58 }
0x101c   :  { %1229 = vrot.lane.b32.xlu1 %v1227_v57, %s1979_s23 }
0x108a   :  { %v1179_v59 = vpop.permute.xlu0 %1178 }
0x108b   :  { %1812 = vmatmul.mubr.msk.bf16.vlgmr.msra.gmra.mrb[24].mxu0 %vm92_vm2, %v1179_v59  ;;  %v1401_v59 = vunpack.c.l.bf16 %v1658_v52 }
0x108c   :  { %1824 = vmatpush3.bf16.msra.mxu0 %v2012_v1  ;;  %1827 = vmatprep.mubr.msk.bf16.mxu0 %vm1978_vm1, %v1977_v0  ;;  %v1648_v1 = vld [vmem:[%s2463_s0 + $0x6] sm:$0x1] }
0x108d   :  { %1825 = vmatprep.subr.bf16.mxu0 %v1977_v0  ;;  %v1175_v62 = vunpack.c.l.bf16 %v1648_v1 }
0x108e   :  { %v1230_v60 = vpop.permute.xlu1 %1229 }
0x108f   :  { %1820 = vmatmul.mubr.msk.bf16.vlgmr.msra.gmra.mrb[24].mxu1 %vm92_vm2, %v1230_v60 }
0x1090   :  { %1832 = vmatpush3.bf16.msra.mxu1 %v2026_v2  ;;  %1826 = vmatpush3.bf16.msra.mxu0 %v2036_v3  ;;  %v1226_v3 = vunpack.c.l.bf16 %v1650_v63 }
0x1091   :  { %1833 = vmatprep.subr.bf16.mxu1 %v1977_v0  ;;  %1835 = vmatprep.mubr.msk.bf16.mxu1 %vm1978_vm1, %v1977_v0 }
0x1094   :  { %1834 = vmatpush3.bf16.msra.mxu1 %v2043_v4 }
0x115e   :  { %v1217_v6 = vpop.f32.mrb[24].mxu0 }
0x115f   :  { %v1223_v2 = vadd.f32 %v1217_v6, %v1175_v62  ;;  %v1813_v7 = vpop.f32.mrb[25].mxu0 }
0x1160   :  { %v1220_v8 = vpop.f32.mrb[26].mxu0 }
0x1161   :  { %1945 = vtanh.f32 %v1223_v2  ;;  %v1814_v9 = vpop.f32.mrb[27].mxu0  ;;  %v1652_v17 = vmul.f32 -1.442695, %v1223_v2 }
0x1162   :  { %v1268_v10 = vpop.f32.mrb[24].mxu1 }
0x1163   :  { %v1274_v0 = vadd.f32 %v1268_v10, %v1226_v3  ;;  %v1821_v12 = vpop.f32.mrb[25].mxu1 }
0x1164   :  { %v1271_v4 = vpop.f32.mrb[26].mxu1 }
0x1165   :  { %1947 = vtanh.f32 %v1274_v0  ;;  %v1822_v13 = vpop.f32.mrb[27].mxu1  ;;  %v1653_v18 = vmul.f32 -1.442695, %v1274_v0 }
0x1166   :  { %1949 = vpow2.f32 %v1652_v17 }
0x1167   :  { %1951 = vpow2.f32 %v1653_v18 }
0x116b   :  { %v1946_v15 = vpop.eup %1945 }
0x116c   :  { %1284 = vrot.lane.b32.xlu0 %v1946_v15, %s1980_s27 }
0x116f   :  { %v1948_v16 = vpop.eup %1947 }
0x1170   :  { %1308 = vrot.lane.b32.xlu1 %v1948_v16, %s1980_s27  ;;  %v1950_v19 = vpop.eup %1949 }
0x1171   :  { %v1278_v20 = vadd.f32 1.0, %v1950_v19  ;;  %v1952_v21 = vpop.eup %1951 }
0x1172   :  { %v1302_v23 = vadd.f32 1.0, %v1952_v21 }
0x1173   :  { %1953 = vrcp.f32 %v1278_v20 }
0x1174   :  { %1955 = vrcp.f32 %v1302_v23 }
0x117d   :  { %v1954_v24 = vpop.eup %1953 }
0x117e   :  { %v1956_v28 = vpop.eup %1955  ;;  %v1282_v31 = vmul.f32 %v1954_v24, %v2295_v45 }
0x117f   :  { %v1306_v34 = vmul.f32 %v1956_v28, %v2299_v48 }
0x11de   :  { %v1285_v26 = vpop.permute.xlu0 %1284 }
0x11df   :  { %v1287_v27 = vmul.f32 %v1954_v24, %v1285_v26 }
0x11e1   :  { %1289 = vrot.lane.b32.xlu0 %v1287_v27, %s1979_s23  ;;  %v1981_v27 = vmov 1983009808  }
0x11e2   :  { %v1309_v29 = vpop.permute.xlu1 %1308 }
0x11e3   :  { %v1311_v30 = vmul.f32 %v1956_v28, %v1309_v29  ;;  %v271_v29 = vlaneseq }
0x11e5   :  { %1313 = vrot.lane.b32.xlu1 %v1311_v30, %s1979_s23 }
0x1253   :  { %v1290_v32 = vpop.permute.xlu0 %1289 }
0x1254   :  { %v1292_v33 = vadd.f32 %v1290_v32, %v1282_v31 }
0x1256   :  { %1957 = vtanh.f32 %v1292_v33 }
0x1257   :  { %v1314_v36 = vpop.permute.xlu1 %1313 }
0x1258   :  { %v1316_v37 = vadd.f32 %v1314_v36, %v1306_v34  ;;  %v272_v34 = vshrl.u32 %v271_v29, 7 }
0x125a   :  { %1959 = vtanh.f32 %v1316_v37 }
0x1260   :  { %v1958_v39 = vpop.eup %1957 }
0x1261   :  { %1295 = vrot.lane.b32.xlu0 %v1958_v39, %s1980_s27 }
0x1264   :  { %v1960_v40 = vpop.eup %1959 }
0x1265   :  { %1319 = vrot.lane.b32.xlu1 %v1960_v40, %s1980_s27 }
0x12d3   :  { %v1296_v41 = vpop.permute.xlu0 %1295 }
0x12d4   :  { %v2340_v42 = vmul.f32 %v1954_v24, %v1296_v41 }
0x12d6   :  { %v1352_v43 = vpack.c.bf16 %v2340_v42, %v2340_v42 }
0x12d7   :  { %v1320_v44 = vpop.permute.xlu1 %1319 }
0x12d8   :  { %v2344_v45 = vmul.f32 %v1956_v28, %v1320_v44  ;;  %1354 = vrot.lane.b32.xlu0 %v1352_v43, %s1979_s23  ;;  %v269_v28 = vunpack.c.l.s4 %v1981_v27 }
0x12da   :  { %v1402_v46 = vpack.c.bf16 %v2344_v45, %v2344_v45  ;;  %v270_v32 = vunpack.c.0.s8 %v269_v28 }
0x12dc   :  { %1404 = vrot.lane.b32.xlu1 %v1402_v46, %s1979_s23  ;;  %v273_v36 = vsub.s32 %v270_v32, %v272_v34 }
0x12de   :  { %v274_v40 = vrot.slane %v2084_v50, %v273_v36  ;;  %v463_v43 = vrot.slane %v2132_v38, %v273_v36  ;;  %v626_v44 = vrot.slane %v2172_v22, %v273_v36  ;;  %v639_v50 = vrot.slane %v2176_v25, %v273_v36 }
0x12df   :  { %v802_v46 = vrot.slane %v2216_v11, %v273_v36  ;;  %v991_v38 = vrot.slane %v2264_v5, %v273_v36  ;;  %v1154_v22 = vrot.slane %v2304_v54, %v273_v36  ;;  %v1167_v25 = vrot.slane %v2308_v58, %v273_v36 }
0x12e0   :  { %v1330_v11 = vrot.slane %v2340_v42, %v273_v36 }
0x134a   :  { %v1355_v47 = vpop.permute.xlu0 %1354 }
0x134b   :  { %1828 = vmatmul.mubr.msk.bf16.vlgmr.msra.gmra.mrb[28].mxu0 %vm92_vm2, %v1355_v47 }
0x134e   :  { %v1405_v48 = vpop.permute.xlu1 %1404 }
0x134f   :  { %1836 = vmatmul.mubr.msk.bf16.vlgmr.msra.gmra.mrb[28].mxu1 %vm92_vm2, %v1405_v48 }
0x141e   :  { %v1393_v55 = vpop.f32.mrb[28].mxu0 }
0x141f   :  { %v1399_v56 = vadd.f32 %v1393_v55, %v1351_v51  ;;  %v1829_v57 = vpop.f32.mrb[29].mxu0 }
0x1420   :  { %v1396_v60 = vpop.f32.mrb[30].mxu0 }
0x1421   :  { %1961 = vtanh.f32 %v1399_v56  ;;  %v1830_v1 = vpop.f32.mrb[31].mxu0  ;;  %v1660_v9 = vmul.f32 -1.442695, %v1399_v56 }
0x1422   :  { %v1443_v62 = vpop.f32.mrb[28].mxu1 }
0x1423   :  { %v1449_v63 = vadd.f32 %v1443_v62, %v1401_v59  ;;  %v1837_v6 = vpop.f32.mrb[29].mxu1 }
0x1424   :  { %v1446_v2 = vpop.f32.mrb[30].mxu1 }
0x1425   :  { %1963 = vtanh.f32 %v1449_v63  ;;  %v1838_v7 = vpop.f32.mrb[31].mxu1  ;;  %v1661_v10 = vmul.f32 -1.442695, %v1449_v63 }
0x1426   :  { %1965 = vpow2.f32 %v1660_v9 }
0x1427   :  { %1967 = vpow2.f32 %v1661_v10 }
0x142b   :  { %v1962_v3 = vpop.eup %1961 }
0x142c   :  { %1459 = vrot.lane.b32.xlu0 %v1962_v3, %s1980_s27 }
0x142f   :  { %v1964_v8 = vpop.eup %1963 }
0x1430   :  { %1483 = vrot.lane.b32.xlu1 %v1964_v8, %s1980_s27  ;;  %v1966_v0 = vpop.eup %1965 }
0x1431   :  { %v1453_v12 = vadd.f32 1.0, %v1966_v0  ;;  %v1968_v4 = vpop.eup %1967 }
0x1432   :  { %v1477_v13 = vadd.f32 1.0, %v1968_v4 }
0x1433   :  { %1969 = vrcp.f32 %v1453_v12 }
0x1434   :  { %1971 = vrcp.f32 %v1477_v13 }
0x143d   :  { %v1970_v15 = vpop.eup %1969 }
0x143e   :  { %v1972_v18 = vpop.eup %1971  ;;  %v1457_v21 = vmul.f32 %v1970_v15, %v1292_v33  ;;  %v287_v33 = vrot.slane %v2088_v53, %v273_v36  ;;  %v815_v53 = vrot.slane %v2220_v14, %v273_v36  ;;  %v1343_v14 = vrot.slane %v2344_v45, %v273_v36 }
0x143f   :  { %v1481_v26 = vmul.f32 %v1972_v18, %v1316_v37  ;;  %v450_v37 = vrot.slane %v2128_v35, %v273_v36  ;;  %v978_v35 = vrot.slane %v2260_v61, %v273_v36 }
0x149e   :  { %v1460_v16 = vpop.permute.xlu0 %1459 }
0x149f   :  { %v1462_v17 = vmul.f32 %v1970_v15, %v1460_v16 }
0x14a1   :  { %1464 = vrot.lane.b32.xlu0 %v1462_v17, %s1979_s23 }
0x14a2   :  { %v1484_v19 = vpop.permute.xlu1 %1483 }
0x14a3   :  { %v1486_v20 = vmul.f32 %v1972_v18, %v1484_v19 }
0x14a5   :  { %1488 = vrot.lane.b32.xlu1 %v1486_v20, %s1979_s23 }
0x1513   :  { %v1465_v23 = vpop.permute.xlu0 %1464 }
0x1514   :  { %v1467_v24 = vadd.f32 %v1465_v23, %v1457_v21 }
0x1516   :  { %1973 = vtanh.f32 %v1467_v24  ;;  %v1531_v58 = vrot.slane %v1467_v24, %v273_v36 }
0x1517   :  { %v1489_v30 = vpop.permute.xlu1 %1488 }
0x1518   :  { %v1491_v31 = vadd.f32 %v1489_v30, %v1481_v26 }
0x151a   :  { %1975 = vtanh.f32 %v1491_v31  ;;  %v1544_v45 = vrot.slane %v1491_v31, %v273_v36 }
0x1520   :  { %v1974_v39 = vpop.eup %1973 }
0x1521   :  { %1470 = vrot.lane.b32.xlu0 %v1974_v39, %s1980_s27 }
0x1524   :  { %v1976_v41 = vpop.eup %1975 }
0x1525   :  { %1494 = vrot.lane.b32.xlu1 %v1976_v41, %s1980_s27  ;;  %275 = vrot.lane.b32.xlu0 %v274_v40, %s1979_s23 }
0x1529   :  { %288 = vrot.lane.b32.xlu1 %v287_v33, %s1979_s23  ;;  %451 = vrot.lane.b32.xlu0 %v450_v37, %s1979_s23 }
0x152d   :  { %464 = vrot.lane.b32.xlu1 %v463_v43, %s1979_s23  ;;  %627 = vrot.lane.b32.xlu0 %v626_v44, %s1979_s23 }
0x1531   :  { %640 = vrot.lane.b32.xlu1 %v639_v50, %s1979_s23  ;;  %803 = vrot.lane.b32.xlu0 %v802_v46, %s1979_s23 }
0x1535   :  { %816 = vrot.lane.b32.xlu1 %v815_v53, %s1979_s23  ;;  %979 = vrot.lane.b32.xlu0 %v978_v35, %s1979_s23 }
0x1539   :  { %992 = vrot.lane.b32.xlu1 %v991_v38, %s1979_s23  ;;  %1155 = vrot.lane.b32.xlu0 %v1154_v22, %s1979_s23 }
0x153d   :  { %1168 = vrot.lane.b32.xlu1 %v1167_v25, %s1979_s23  ;;  %1331 = vrot.lane.b32.xlu0 %v1330_v11, %s1979_s23 }
0x1541   :  { %1344 = vrot.lane.b32.xlu1 %v1343_v14, %s1979_s23 }
0x1593   :  { %v1471_v61 = vpop.permute.xlu0 %1470 }
0x1594   :  { %v1473_v5 = vmul.f32 %v1970_v15, %v1471_v61 }
0x1596   :  { %v1505_v47 = vrot.slane %v1473_v5, %v273_v36 }
0x1597   :  { %v1495_v54 = vpop.permute.xlu1 %1494  ;;  %v276_v48 = vpop.permute.xlu0 %275 }
0x1598   :  { %v1497_v49 = vmul.f32 %v1972_v18, %v1495_v54  ;;  %279 = vst.msk [vmem:[%s2465_s3] sm:$0x3] %vm57_vm0, %v276_v48  ;;  %1506 = vrot.lane.b32.xlu0 %v1505_v47, %s1979_s23 }
0x159a   :  { %v1518_v42 = vrot.slane %v1497_v49, %v273_v36 }
0x159b   :  { %v289_v51 = vpop.permute.xlu1 %288  ;;  %v452_v52 = vpop.permute.xlu0 %451 }
0x159c   :  { %1607 = vst.msk [vmem:[%s2466_s4 + $0xe] sm:$0x3] %vm57_vm0, %v289_v51  ;;  %1614 = vst.msk [vmem:[%s2465_s3 + $0x2] sm:$0x3] %vm57_vm0, %v452_v52  ;;  %1519 = vrot.lane.b32.xlu1 %v1518_v42, %s1979_s23  ;;  %1532 = vrot.lane.b32.xlu0 %v1531_v58, %s1982_s8 }
0x159f   :  { %v465_v55 = vpop.permute.xlu1 %464  ;;  %v628_v56 = vpop.permute.xlu0 %627 }
0x15a0   :  { %1615 = vst.msk [vmem:[%s2466_s4 + $0xc] sm:$0x3] %vm57_vm0, %v465_v55  ;;  %1622 = vst.msk [vmem:[%s2465_s3 + $0x4] sm:$0x3] %vm57_vm0, %v628_v56  ;;  %1545 = vrot.lane.b32.xlu1 %v1544_v45, %s1982_s8 }
0x15a3   :  { %v641_v57 = vpop.permute.xlu1 %640  ;;  %v804_v59 = vpop.permute.xlu0 %803 }
0x15a4   :  { %1623 = vst.msk [vmem:[%s2466_s4 + $0xa] sm:$0x3] %vm57_vm0, %v641_v57  ;;  %1630 = vst.msk [vmem:[%s2465_s3 + $0x6] sm:$0x3] %vm57_vm0, %v804_v59 }
0x15a7   :  { %v817_v60 = vpop.permute.xlu1 %816  ;;  %v980_v1 = vpop.permute.xlu0 %979 }
0x15a8   :  { %1631 = vst.msk [vmem:[%s2466_s4 + $0x8] sm:$0x3] %vm57_vm0, %v817_v60  ;;  %1638 = vst.msk [vmem:[%s2465_s3 + $0x8] sm:$0x3] %vm57_vm0, %v980_v1 }
0x15ab   :  { %v993_v62 = vpop.permute.xlu1 %992  ;;  %v1156_v63 = vpop.permute.xlu0 %1155 }
0x15ac   :  { %1639 = vst.msk [vmem:[%s2466_s4 + $0x6] sm:$0x3] %vm57_vm0, %v993_v62  ;;  %1646 = vst.msk [vmem:[%s2465_s3 + $0xa] sm:$0x3] %vm57_vm0, %v1156_v63 }
0x15af   :  { %v1169_v6 = vpop.permute.xlu1 %1168  ;;  %v1332_v2 = vpop.permute.xlu0 %1331 }
0x15b0   :  { %1647 = vst.msk [vmem:[%s2466_s4 + $0x4] sm:$0x3] %vm57_vm0, %v1169_v6  ;;  %1654 = vst.msk [vmem:[%s2465_s3 + $0xc] sm:$0x3] %vm57_vm0, %v1332_v2 }
0x15b3   :  { %v1345_v7 = vpop.permute.xlu1 %1344 }
0x15b4   :  { %1655 = vst.msk [vmem:[%s2466_s4 + $0x2] sm:$0x3] %vm57_vm0, %v1345_v7 }
0x160a   :  { %v1507_v3 = vpop.permute.xlu0 %1506 }
0x160b   :  { %1662 = vst.msk [vmem:[%s2465_s3 + $0xe] sm:$0x3] %vm57_vm0, %v1507_v3  ;;  %1523 = vst.msk [vmem:[#allocation2] sm:$0x3] %vm57_vm0, %v1507_v3 }
0x160e   :  { %v1520_v8 = vpop.permute.xlu1 %1519  ;;  %v1533_v9 = vpop.permute.xlu0 %1532 }
0x160f   :  { %1522 = vst.msk [vmem:[%s2466_s4] sm:$0x3] %vm57_vm0, %v1520_v8  ;;  %1536 = vst.msk [vmem:[#allocation2 + $0x2] sm:$0x3] %vm57_vm0, %v1520_v8 }
0x1610   :  { %1535 = vst.msk [vmem:[#allocation3] sm:$0x3] %vm57_vm0, %v1533_v9 }
0x1612   :  { %v1546_v10 = vpop.permute.xlu1 %1545 }
0x1613   :  { %1548 = vst.msk [vmem:[#allocation3 + $0x2] sm:$0x3] %vm57_vm0, %v1546_v10 }

</bundles_post_ra>
